<compile_context>
chip_gen: v6e
topology: v6e:2x2x1
jax: 0.10.0
libtpu: 0.0.40
codegen_flags: <defaults>
</compile_context>

<pallas_src>
import functools

import jax
import jax.numpy as jnp
from jax import lax
from jax.experimental import pallas as pl
from jax.experimental.pallas import tpu as pltpu

# v7x has 64 MiB VMEM per TensorCore; budget tiles to ~40 MiB and cap the scoped
# limit at 48 MiB so the same kernel is safe on v7x and leaves slack on v5e/v6e.
# (On v6e/v5e with 128 MiB VMEM, both numbers can be raised to grow TH further.)
_TILE_VMEM_BUDGET = 40 * 1024 * 1024
_VMEM_LIMIT_BYTES = 48 * 1024 * 1024


def fold_bn(gamma, beta, mean, var, eps=1e-5):
    scale = gamma / jnp.sqrt(var + eps)
    bias = beta - mean * scale
    return scale, bias


# --------------------------------------------------------------------------- kernel
def _bottleneck_kernel(xm_ref, xt_ref, xb_ref,
                       w1_ref, b1_ref, w2_ref, b2_ref, w3_ref, b3_ref,
                       o_ref, patch_ref):
    TH, W, Cin = xm_ref.shape          # row-tile of x (batch dim squeezed away)
    Cw = w1_ref.shape[1]               # bottleneck width
    Cout = w3_ref.shape[1]             # output channels (== Cin, identity residual)
    i = pl.program_id(1)
    nrows = pl.num_programs(1)

    # ---- conv1 (1x1) + bn1(bias) + relu, fused over main tile + 2 halo rows:
    #      a single matmul with M = (TH+2)*W.
    x_all = jnp.concatenate([xt_ref[...], xm_ref[...], xb_ref[...]], axis=0)  # bf16
    h1 = jnp.dot(x_all.reshape((TH + 2) * W, Cin), w1_ref[...],
                 preferred_element_type=jnp.float32)
    h1 = jnp.maximum(h1 + b1_ref[...], 0.0).reshape(TH + 2, W, Cw)

    # Zero the halo rows at the image border (they are conv2's zero padding).
    # jnp.where (not a 0/1 multiply) so a blown-up folded-BN value cannot inject
    # NaN via 0 * Inf.
    rows = lax.broadcasted_iota(jnp.int32, (TH + 2, 1, 1), 0)
    valid = jnp.logical_and(jnp.logical_or(rows != 0, i > 0),
                            jnp.logical_or(rows != TH + 1, i < nrows - 1))
    h1 = jnp.where(valid, h1, 0.0).astype(jnp.bfloat16)

    # ---- conv2 (3x3, pad=1) + bn2(bias) + relu.
    # kx-im2col built ONCE (hoisted out of the ky loop) into a VMEM scratch:
    # patch[:, x, :] = [h1[:, x-1], h1[:, x], h1[:, x+1]]  (zeros at the W border).
    zcol = jnp.zeros((TH + 2, 1, Cw), jnp.bfloat16)
    left = jnp.concatenate([zcol, h1[:, :W - 1, :]], axis=1)    # kx = 0 tap (x-1)
    right = jnp.concatenate([h1[:, 1:, :], zcol], axis=1)       # kx = 2 tap (x+1)
    patch_ref[...] = jnp.concatenate([left, h1, right], axis=-1)  # (TH+2, W, 3*Cw)

    # ky loop: leading-dim row slices of the scratch, 3 matmuls with K = 3*Cw.
    acc = jnp.dot(patch_ref[0:TH].reshape(TH * W, 3 * Cw), w2_ref[0],
                  preferred_element_type=jnp.float32)
    for ky in (1, 2):
        acc = acc + jnp.dot(patch_ref[ky:ky + TH].reshape(TH * W, 3 * Cw),
                            w2_ref[ky], preferred_element_type=jnp.float32)
    h2 = jnp.maximum(acc + b2_ref[...], 0.0)

    # ---- attention: TODO(synk): self.attention is never defined in __init__; identity.

    # ---- conv3 (1x1) + bn3(bias) + identity residual + relu.
    out = jnp.dot(h2.astype(jnp.bfloat16), w3_ref[...],
                  preferred_element_type=jnp.float32) + b3_ref[...]
    # Residual re-read late from the resident input VMEM block (downsample=None).
    out = out + xm_ref[...].reshape(TH * W, Cout).astype(jnp.float32)
    o_ref[...] = jnp.maximum(out, 0.0).reshape(TH, W, Cout).astype(o_ref.dtype)


# --------------------------------------------------------------------------- helpers
@functools.lru_cache(maxsize=None)
def _single_buffer_ok():
    """Probe (once) whether BlockSpec(pipeline_mode=pl.Buffered(1)) compiles & runs."""
    try:
        def _copy(x_ref, o_ref):
            o_ref[...] = x_ref[...]
        f = pl.pallas_call(
            _copy,
            out_shape=jax.ShapeDtypeStruct((8, 128), jnp.float32),
            grid=(1,),
            in_specs=[pl.BlockSpec((8, 128), lambda i: (0, 0),
                                   pipeline_mode=pl.Buffered(1))],
            out_specs=pl.BlockSpec((8, 128), lambda i: (0, 0)),
        )
        jax.block_until_ready(f(jnp.zeros((8, 128), jnp.float32)))
        return True
    except Exception:
        return False


def _vmem_estimate_bytes(th, W, Cin, Cw, Cout):
    """Rough per-step VMEM footprint (double-buffered activations + scratch + weights)."""
    act = 2 * (th * W * Cin + 2 * W * Cin + th * W * Cout) * 2   # bf16, 2 buffers
    patch = (th + 2) * W * 3 * Cw * 2                            # bf16 scratch
    weights = (Cin * Cw + 9 * Cw * Cw + Cw * Cout) * 2           # bf16
    biases = (2 * Cw + Cout) * 4
    return act + patch + weights + biases


def _pick_block_rows(N, H, W, Cin, Cw, Cout, budget_bytes=_TILE_VMEM_BUDGET):
    divisors = [d for d in range(1, H + 1) if H % d == 0]
    target = -(-512 // max(W, 1))                  # TH*W >= 512 -> MXU-friendly M
    candidates = [d for d in divisors if d >= target]
    th = candidates[0] if candidates else divisors[-1]
    # Keep >= 2 grid programs so both v7x TensorCores get work.
    if N * (H // th) < 2:
        smaller = [d for d in divisors if d < th]
        if smaller:
            th = smaller[-1]
    # Stay inside the v7x-safe VMEM budget.
    while _vmem_estimate_bytes(th, W, Cin, Cw, Cout) > budget_bytes:
        smaller = [d for d in divisors if d < th]
        if not smaller:
            break
        th = smaller[-1]
    return th


# --------------------------------------------------------------------------- wrappers
def bottleneck_forward_nhwc(x, params, block_rows=None):
    """x: (N, H, W, Cin), f32 or bf16.  Returns (N, H, W, Cout) bf16."""
    N, H, W, Cin = x.shape
    w1, w2, w3 = params["w1"], params["w2"], params["w3"]
    Cw, Cout = w1.shape[1], w3.shape[1]
    if Cin != Cout:
        raise ValueError("identity residual (downsample=None) needs Cin == Cout")

    s1, b1 = fold_bn(*params["bn1"])
    s2, b2 = fold_bn(*params["bn2"])
    s3, b3 = fold_bn(*params["bn3"])

    # Fold BN scales into the conv weights; kernel only adds the per-channel bias.
    w1f = (w1 * s1[None, :]).astype(jnp.bfloat16)                       # (Cin, Cw)
    w2f = (w2 * s2[None, None, :]).reshape(3, 3 * Cw, Cw).astype(jnp.bfloat16)  # K = kx*Cw+cin
    w3f = (w3 * s3[None, :]).astype(jnp.bfloat16)                       # (Cw, Cout)
    b1r = b1.reshape(1, Cw).astype(jnp.float32)
    b2r = b2.reshape(1, Cw).astype(jnp.float32)
    b3r = b3.reshape(1, Cout).astype(jnp.float32)

    # bf16 activation I/O (callers that already have bf16 NHWC skip this cast).
    xb = x.astype(jnp.bfloat16)

    TH = block_rows if block_rows is not None else _pick_block_rows(N, H, W, Cin, Cw, Cout)
    if H % TH:
        raise ValueError("H must be divisible by block_rows")
    grid = (N, H // TH)

    # Weights/biases: constant index_maps -> fetched once, VMEM resident across the
    # grid; single-buffer them (halves their VMEM footprint) when supported.
    if _single_buffer_ok():
        def wspec(shape, imap):
            return pl.BlockSpec(shape, imap, pipeline_mode=pl.Buffered(1))
    else:
        def wspec(shape, imap):
            return pl.BlockSpec(shape, imap)
    cmap2 = lambda n, i: (0, 0)
    cmap3 = lambda n, i: (0, 0, 0)

    in_specs = [
        # main row tile of x (also the residual)
        pl.BlockSpec((None, TH, W, Cin), lambda n, i: (n, i, 0, 0)),
        # 1-row top/bottom halo.  NOTE: the halo row-block size is 1, so the clamped
        # element row index equals the block index — do not change this block size
        # without revisiting the index_map.
        pl.BlockSpec((None, 1, W, Cin),
                     lambda n, i: (n, jnp.maximum(i * TH - 1, 0), 0, 0)),
        pl.BlockSpec((None, 1, W, Cin),
                     lambda n, i: (n, jnp.minimum((i + 1) * TH, H - 1), 0, 0)),
        wspec((Cin, Cw), cmap2),
        wspec((1, Cw), cmap2),
        wspec((3, 3 * Cw, Cw), cmap3),
        wspec((1, Cw), cmap2),
        wspec((Cw, Cout), cmap2),
        wspec((1, Cout), cmap2),
    ]
    out_specs = pl.BlockSpec((None, TH, W, Cout), lambda n, i: (n, i, 0, 0))

    out = pl.pallas_call(
        _bottleneck_kernel,
        out_shape=jax.ShapeDtypeStruct((N, H, W, Cout), jnp.bfloat16),
        grid=grid,
        in_specs=in_specs,
        out_specs=out_specs,
        scratch_shapes=[pltpu.VMEM((TH + 2, W, 3 * Cw), jnp.bfloat16)],
        compiler_params=pltpu.CompilerParams(
            dimension_semantics=("parallel", "parallel"),   # megacore-friendly (v7x)
            vmem_limit_bytes=_VMEM_LIMIT_BYTES),
    )(xb, xb, xb, w1f, b1r, w2f, b2r, w3f, b3r)
    return out


@functools.partial(jax.jit, static_argnames=("block_rows",))
def bottleneck_forward(x_nchw, params, block_rows=None):
    """PyTorch-style NCHW entry point: (N, Cin, H, W) -> (N, Cout, H, W) bf16."""
    # TODO(synk): NHWC callers should use bottleneck_forward_nhwc directly (and pass
    # bf16) to avoid the transpose/cast HBM passes at this API boundary.
    x = jnp.transpose(x_nchw, (0, 2, 3, 1))
    out = bottleneck_forward_nhwc(x, params, block_rows=block_rows)
    return jnp.transpose(out, (0, 3, 1, 2))


# --------------------------------------------------------------------------- reference
def reference_forward(x_nchw, params):
    """Pure-JAX f32 reference (NHWC convs) for validation."""
    x = jnp.transpose(x_nchw, (0, 2, 3, 1))
    Cw = params["w1"].shape[1]
    s1, b1 = fold_bn(*params["bn1"])
    s2, b2 = fold_bn(*params["bn2"])
    s3, b3 = fold_bn(*params["bn3"])

    h = jnp.einsum("nhwc,cd->nhwd", x, params["w1"]) * s1 + b1
    h = jnp.maximum(h, 0.0)
    w2 = params["w2"].reshape(3, 3, Cw, Cw)  # HWIO
    h = lax.conv_general_dilated(h, w2, window_strides=(1, 1), padding="SAME",
                                 dimension_numbers=("NHWC", "HWIO", "NHWC"))
    h = jnp.maximum(h * s2 + b2, 0.0)
    o = jnp.einsum("nhwc,cd->nhwd", h, params["w3"]) * s3 + b3
    o = jnp.maximum(o + x, 0.0)
    return jnp.transpose(o, (0, 3, 1, 2))


def make_params(key, inplanes, planes, base_width=64, groups=1, expansion=4):
    width = int(planes * (base_width / 64.0)) * groups
    cout = planes * expansion
    ks = jax.random.split(key, 6)

    def bn_params(k, c):
        k1, k2, k3, k4 = jax.random.split(k, 4)
        gamma = 1.0 + 0.1 * jax.random.normal(k1, (c,), jnp.float32)
        beta = 0.1 * jax.random.normal(k2, (c,), jnp.float32)
        mean = 0.1 * jax.random.normal(k3, (c,), jnp.float32)
        var = jnp.abs(1.0 + 0.1 * jax.random.normal(k4, (c,), jnp.float32))
        return (gamma, beta, mean, var)

    return {
        # conv1x1 (torch OIHW (width, inplanes, 1, 1)) stored as (inplanes, width)
        "w1": 0.1 * jax.random.normal(ks[0], (inplanes, width), jnp.float32),
        # conv3x3 (torch OIHW (width, width, 3, 3)) stored as (ky*3+kx, in, out)
        "w2": 0.1 * jax.random.normal(ks[1], (9, width, width), jnp.float32),
        # conv1x1 (torch OIHW (cout, width, 1, 1)) stored as (width, cout)
        "w3": 0.1 * jax.random.normal(ks[2], (width, cout), jnp.float32),
        "bn1": bn_params(ks[3], width),
        "bn2": bn_params(ks[4], width),
        "bn3": bn_params(ks[5], cout),
    }


if __name__ == "__main__":
    # Identity bottleneck block: inplanes == planes * expansion (downsample=None).
    N, inplanes, planes, H, W = 2, 16, 4, 16, 16

    key = jax.random.PRNGKey(0)
    kx, kp = jax.random.split(key)
    x = jax.random.normal(kx, (N, inplanes, H, W), jnp.float32)   # NCHW input
    params = make_params(kp, inplanes, planes)

    out = bottleneck_forward(x, params)
    out = jax.block_until_ready(out)

    ref = reference_forward(x, params)
    assert out.shape == (N, planes * 4, H, W)
    out_f32 = out.astype(jnp.float32)
    max_err = float(jnp.max(jnp.abs(out_f32 - ref)))
    # bf16 activation I/O + bf16 MXU operands (f32 accumulation) -> looser tolerance
    assert jnp.allclose(out_f32, ref, atol=5e-2, rtol=5e-2), \
        f"mismatch vs ref, max_err={max_err}"

    print("KERNEL_OK")
</pallas_src>

<mosaic_0001>
module attributes {stable_mosaic.version = 11 : i64} {
  func.func @_bottleneck_kernel(%arg0: i32, %arg1: i32, %arg2: memref<1x16x16x16xbf16, #tpu.memory_space<vmem>>, %arg3: memref<1x1x16x16xbf16, #tpu.memory_space<vmem>>, %arg4: memref<1x1x16x16xbf16, #tpu.memory_space<vmem>>, %arg5: memref<16x4xbf16, #tpu.memory_space<vmem>>, %arg6: memref<1x4xf32, #tpu.memory_space<vmem>>, %arg7: memref<3x12x4xbf16, #tpu.memory_space<vmem>>, %arg8: memref<1x4xf32, #tpu.memory_space<vmem>>, %arg9: memref<4x16xbf16, #tpu.memory_space<vmem>>, %arg10: memref<1x16xf32, #tpu.memory_space<vmem>>, %arg11: memref<1x16x16x16xbf16, #tpu.memory_space<vmem>>, %arg12: memref<18x16x12xbf16, #tpu.memory_space<vmem>>) attributes {dimension_semantics = [#tpu.dimension_semantics<parallel>, #tpu.dimension_semantics<parallel>], iteration_bounds = array<i64: 2, 1>, scalar_prefetch = 0 : i64, scratch_operands = 1 : i64, tpu.core_type = #tpu.core_type<tc>, window_params = [{transform_indices = @transform_0, window_bounds = array<i64: 1, 16, 16, 16>}, {transform_indices = @transform_1, window_bounds = array<i64: 1, 1, 16, 16>}, {transform_indices = @transform_2, window_bounds = array<i64: 1, 1, 16, 16>}, {pipeline_mode = #tpu.pipeline_mode<synchronous>, transform_indices = @transform_3, window_bounds = array<i64: 16, 4>}, {pipeline_mode = #tpu.pipeline_mode<synchronous>, transform_indices = @transform_4, window_bounds = array<i64: 1, 4>}, {pipeline_mode = #tpu.pipeline_mode<synchronous>, transform_indices = @transform_5, window_bounds = array<i64: 3, 12, 4>}, {pipeline_mode = #tpu.pipeline_mode<synchronous>, transform_indices = @transform_6, window_bounds = array<i64: 1, 4>}, {pipeline_mode = #tpu.pipeline_mode<synchronous>, transform_indices = @transform_7, window_bounds = array<i64: 4, 16>}, {pipeline_mode = #tpu.pipeline_mode<synchronous>, transform_indices = @transform_8, window_bounds = array<i64: 1, 16>}, {transform_indices = @transform_9, window_bounds = array<i64: 1, 16, 16, 16>}]} {
    %c0 = arith.constant 0 : index
    %c0_0 = arith.constant 0 : index
    %c0_1 = arith.constant 0 : index
    %c0_2 = arith.constant 0 : index
    %0 = vector.load %arg3[%c0, %c0_0, %c0_1, %c0_2] : memref<1x1x16x16xbf16, #tpu.memory_space<vmem>>, vector<1x1x16x16xbf16>
    %1 = vector.shape_cast %0 : vector<1x1x16x16xbf16> to vector<1x16x16xbf16>
    %c0_3 = arith.constant 0 : index
    %c0_4 = arith.constant 0 : index
    %c0_5 = arith.constant 0 : index
    %c0_6 = arith.constant 0 : index
    %2 = vector.load %arg2[%c0_3, %c0_4, %c0_5, %c0_6] : memref<1x16x16x16xbf16, #tpu.memory_space<vmem>>, vector<1x16x16x16xbf16>
    %3 = vector.shape_cast %2 : vector<1x16x16x16xbf16> to vector<16x16x16xbf16>
    %c0_7 = arith.constant 0 : index
    %c0_8 = arith.constant 0 : index
    %c0_9 = arith.constant 0 : index
    %c0_10 = arith.constant 0 : index
    %4 = vector.load %arg4[%c0_7, %c0_8, %c0_9, %c0_10] : memref<1x1x16x16xbf16, #tpu.memory_space<vmem>>, vector<1x1x16x16xbf16>
    %5 = vector.shape_cast %4 : vector<1x1x16x16xbf16> to vector<1x16x16xbf16>
    %6 = tpu.concatenate %1, %3, %5 in 0 : vector<1x16x16xbf16>, vector<16x16x16xbf16>, vector<1x16x16xbf16> -> vector<18x16x16xbf16>
    %7 = vector.shape_cast %6 : vector<18x16x16xbf16> to vector<288x16xbf16>
    %c0_11 = arith.constant 0 : index
    %c0_12 = arith.constant 0 : index
    %8 = vector.load %arg5[%c0_11, %c0_12] : memref<16x4xbf16, #tpu.memory_space<vmem>>, vector<16x4xbf16>
    %cst = arith.constant dense<0.000000e+00> : vector<288x4xf32>
    %9 = tpu.matmul %7, %8, %cst {dimension_numbers = #tpu.dot_dimension_numbers<[1], [0], [0], [1], [0, 0, 1, 1], [], []>} : vector<288x16xbf16>, vector<16x4xbf16>, vector<288x4xf32> -> vector<288x4xf32>
    %c0_13 = arith.constant 0 : index
    %c0_14 = arith.constant 0 : index
    %10 = vector.load %arg6[%c0_13, %c0_14] : memref<1x4xf32, #tpu.memory_space<vmem>>, vector<1x4xf32>
    %11 = vector.broadcast %10 : vector<1x4xf32> to vector<288x4xf32>
    %12 = arith.addf %9, %11 : vector<288x4xf32>
    %cst_15 = arith.constant 0.000000e+00 : f32
    %13 = vector.broadcast %cst_15 : f32 to vector<288x4xf32>
    %14 = arith.maximumf %12, %13 : vector<288x4xf32>
    %15 = vector.shape_cast %14 : vector<288x4xf32> to vector<18x16x4xf32>
    %16 = tpu.iota {dimensions = array<i32: 0>} : vector<18x1x1xi32>
    %c0_i32 = arith.constant 0 : i32
    %17 = vector.broadcast %c0_i32 : i32 to vector<18x1x1xi32>
    %18 = arith.cmpi ne, %16, %17 : vector<18x1x1xi32>
    %c0_i32_16 = arith.constant 0 : i32
    %19 = arith.cmpi sgt, %arg1, %c0_i32_16 : i32
    %20 = vector.broadcast %19 : i1 to vector<18x1x1xi1>
    %21 = arith.ori %18, %20 : vector<18x1x1xi1>
    %c17_i32 = arith.constant 17 : i32
    %22 = vector.broadcast %c17_i32 : i32 to vector<18x1x1xi32>
    %23 = arith.cmpi ne, %16, %22 : vector<18x1x1xi32>
    %c0_i32_17 = arith.constant 0 : i32
    %24 = arith.cmpi slt, %arg1, %c0_i32_17 : i32
    %25 = vector.broadcast %24 : i1 to vector<18x1x1xi1>
    %26 = arith.ori %23, %25 : vector<18x1x1xi1>
    %27 = arith.andi %21, %26 : vector<18x1x1xi1>
    %cst_18 = arith.constant 0.000000e+00 : f32
    %28 = vector.shape_cast %27 : vector<18x1x1xi1> to vector<18x1x1xi1>
    %29 = vector.broadcast %28 : vector<18x1x1xi1> to vector<18x16x4xi1>
    %30 = vector.broadcast %cst_18 : f32 to vector<18x16x4xf32>
    %31 = arith.select %29, %15, %30 : vector<18x16x4xi1>, vector<18x16x4xf32>
    %32 = arith.truncf %31 : vector<18x16x4xf32> to vector<18x16x4xbf16>
    %cst_19 = arith.constant 0.000000e+00 : bf16
    %33 = vector.broadcast %cst_19 : bf16 to vector<18x1x4xbf16>
    %34 = vector.extract_strided_slice %32 {offsets = [0, 0, 0], sizes = [18, 15, 4], strides = [1, 1, 1]} : vector<18x16x4xbf16> to vector<18x15x4xbf16>
    %35 = tpu.concatenate %33, %34 in 1 : vector<18x1x4xbf16>, vector<18x15x4xbf16> -> vector<18x16x4xbf16>
    %36 = vector.extract_strided_slice %32 {offsets = [0, 1, 0], sizes = [18, 15, 4], strides = [1, 1, 1]} : vector<18x16x4xbf16> to vector<18x15x4xbf16>
    %37 = tpu.concatenate %36, %33 in 1 : vector<18x15x4xbf16>, vector<18x1x4xbf16> -> vector<18x16x4xbf16>
    %38 = tpu.concatenate %35, %32, %37 in 2 : vector<18x16x4xbf16>, vector<18x16x4xbf16>, vector<18x16x4xbf16> -> vector<18x16x12xbf16>
    %c0_20 = arith.constant 0 : index
    %c0_21 = arith.constant 0 : index
    %c0_22 = arith.constant 0 : index
    %39 = vector.load %arg12[%c0_20, %c0_21, %c0_22] : memref<18x16x12xbf16, #tpu.memory_space<vmem>>, vector<18x16x12xbf16>
    tpu.vector_store %arg12[%c0_20, %c0_21, %c0_22], %38 {strides = array<i32>} : memref<18x16x12xbf16, #tpu.memory_space<vmem>>, vector<18x16x12xbf16>,
    %c0_23 = arith.constant 0 : index
    %c0_24 = arith.constant 0 : index
    %c0_25 = arith.constant 0 : index
    %40 = vector.load %arg12[%c0_23, %c0_24, %c0_25] : memref<18x16x12xbf16, #tpu.memory_space<vmem>>, vector<16x16x12xbf16>
    %41 = vector.shape_cast %40 : vector<16x16x12xbf16> to vector<256x12xbf16>
    %c0_26 = arith.constant 0 : index
    %c0_27 = arith.constant 0 : index
    %c0_28 = arith.constant 0 : index
    %42 = vector.load %arg7[%c0_26, %c0_27, %c0_28] : memref<3x12x4xbf16, #tpu.memory_space<vmem>>, vector<1x12x4xbf16>
    %43 = vector.shape_cast %42 : vector<1x12x4xbf16> to vector<12x4xbf16>
    %cst_29 = arith.constant dense<0.000000e+00> : vector<256x4xf32>
    %44 = tpu.matmul %41, %43, %cst_29 {dimension_numbers = #tpu.dot_dimension_numbers<[1], [0], [0], [1], [0, 0, 1, 1], [], []>} : vector<256x12xbf16>, vector<12x4xbf16>, vector<256x4xf32> -> vector<256x4xf32>
    %c1 = arith.constant 1 : index
    %c0_30 = arith.constant 0 : index
    %c0_31 = arith.constant 0 : index
    %45 = vector.load %arg12[%c1, %c0_30, %c0_31] : memref<18x16x12xbf16, #tpu.memory_space<vmem>>, vector<16x16x12xbf16>
    %46 = vector.shape_cast %45 : vector<16x16x12xbf16> to vector<256x12xbf16>
    %c1_32 = arith.constant 1 : index
    %c0_33 = arith.constant 0 : index
    %c0_34 = arith.constant 0 : index
    %47 = vector.load %arg7[%c1_32, %c0_33, %c0_34] : memref<3x12x4xbf16, #tpu.memory_space<vmem>>, vector<1x12x4xbf16>
    %48 = vector.shape_cast %47 : vector<1x12x4xbf16> to vector<12x4xbf16>
    %cst_35 = arith.constant dense<0.000000e+00> : vector<256x4xf32>
    %49 = tpu.matmul %46, %48, %cst_35 {dimension_numbers = #tpu.dot_dimension_numbers<[1], [0], [0], [1], [0, 0, 1, 1], [], []>} : vector<256x12xbf16>, vector<12x4xbf16>, vector<256x4xf32> -> vector<256x4xf32>
    %50 = arith.addf %44, %49 : vector<256x4xf32>
    %c2 = arith.constant 2 : index
    %c0_36 = arith.constant 0 : index
    %c0_37 = arith.constant 0 : index
    %51 = vector.load %arg12[%c2, %c0_36, %c0_37] : memref<18x16x12xbf16, #tpu.memory_space<vmem>>, vector<16x16x12xbf16>
    %52 = vector.shape_cast %51 : vector<16x16x12xbf16> to vector<256x12xbf16>
    %c2_38 = arith.constant 2 : index
    %c0_39 = arith.constant 0 : index
    %c0_40 = arith.constant 0 : index
    %53 = vector.load %arg7[%c2_38, %c0_39, %c0_40] : memref<3x12x4xbf16, #tpu.memory_space<vmem>>, vector<1x12x4xbf16>
    %54 = vector.shape_cast %53 : vector<1x12x4xbf16> to vector<12x4xbf16>
    %cst_41 = arith.constant dense<0.000000e+00> : vector<256x4xf32>
    %55 = tpu.matmul %52, %54, %cst_41 {dimension_numbers = #tpu.dot_dimension_numbers<[1], [0], [0], [1], [0, 0, 1, 1], [], []>} : vector<256x12xbf16>, vector<12x4xbf16>, vector<256x4xf32> -> vector<256x4xf32>
    %56 = arith.addf %50, %55 : vector<256x4xf32>
    %c0_42 = arith.constant 0 : index
    %c0_43 = arith.constant 0 : index
    %57 = vector.load %arg8[%c0_42, %c0_43] : memref<1x4xf32, #tpu.memory_space<vmem>>, vector<1x4xf32>
    %58 = vector.broadcast %57 : vector<1x4xf32> to vector<256x4xf32>
    %59 = arith.addf %56, %58 : vector<256x4xf32>
    %cst_44 = arith.constant 0.000000e+00 : f32
    %60 = vector.broadcast %cst_44 : f32 to vector<256x4xf32>
    %61 = arith.maximumf %59, %60 : vector<256x4xf32>
    %62 = arith.truncf %61 : vector<256x4xf32> to vector<256x4xbf16>
    %c0_45 = arith.constant 0 : index
    %c0_46 = arith.constant 0 : index
    %63 = vector.load %arg9[%c0_45, %c0_46] : memref<4x16xbf16, #tpu.memory_space<vmem>>, vector<4x16xbf16>
    %cst_47 = arith.constant dense<0.000000e+00> : vector<256x16xf32>
    %64 = tpu.matmul %62, %63, %cst_47 {dimension_numbers = #tpu.dot_dimension_numbers<[1], [0], [0], [1], [0, 0, 1, 1], [], []>} : vector<256x4xbf16>, vector<4x16xbf16>, vector<256x16xf32> -> vector<256x16xf32>
    %c0_48 = arith.constant 0 : index
    %c0_49 = arith.constant 0 : index
    %65 = vector.load %arg10[%c0_48, %c0_49] : memref<1x16xf32, #tpu.memory_space<vmem>>, vector<1x16xf32>
    %66 = vector.broadcast %65 : vector<1x16xf32> to vector<256x16xf32>
    %67 = arith.addf %64, %66 : vector<256x16xf32>
    %c0_50 = arith.constant 0 : index
    %c0_51 = arith.constant 0 : index
    %c0_52 = arith.constant 0 : index
    %c0_53 = arith.constant 0 : index
    %68 = vector.load %arg2[%c0_50, %c0_51, %c0_52, %c0_53] : memref<1x16x16x16xbf16, #tpu.memory_space<vmem>>, vector<1x16x16x16xbf16>
    %69 = vector.shape_cast %68 : vector<1x16x16x16xbf16> to vector<16x16x16xbf16>
    %70 = vector.shape_cast %69 : vector<16x16x16xbf16> to vector<256x16xbf16>
    %71 = arith.extf %70 : vector<256x16xbf16> to vector<256x16xf32>
    %72 = arith.addf %67, %71 : vector<256x16xf32>
    %cst_54 = arith.constant 0.000000e+00 : f32
    %73 = vector.broadcast %cst_54 : f32 to vector<256x16xf32>
    %74 = arith.maximumf %72, %73 : vector<256x16xf32>
    %75 = vector.shape_cast %74 : vector<256x16xf32> to vector<16x16x16xf32>
    %76 = arith.truncf %75 : vector<16x16x16xf32> to vector<16x16x16xbf16>
    %c0_55 = arith.constant 0 : index
    %c0_56 = arith.constant 0 : index
    %c0_57 = arith.constant 0 : index
    %c0_58 = arith.constant 0 : index
    %77 = vector.load %arg11[%c0_55, %c0_56, %c0_57, %c0_58] : memref<1x16x16x16xbf16, #tpu.memory_space<vmem>>, vector<1x16x16x16xbf16>
    %78 = vector.shape_cast %77 : vector<1x16x16x16xbf16> to vector<16x16x16xbf16>
    %79 = vector.shape_cast %76 : vector<16x16x16xbf16> to vector<1x16x16x16xbf16>
    tpu.vector_store %arg11[%c0_55, %c0_56, %c0_57, %c0_58], %79 {strides = array<i32>} : memref<1x16x16x16xbf16, #tpu.memory_space<vmem>>, vector<1x16x16x16xbf16>,
    return
  }
  func.func @transform_0(%arg0: i32, %arg1: i32) -> (i32, i32, i32, i32) {
    %c0_i32 = arith.constant 0 : i32
    %c0_i32_0 = arith.constant 0 : i32
    %c0_i32_1 = arith.constant 0 : i32
    return %arg0, %arg1, %c0_i32, %c0_i32_0 : i32, i32, i32, i32
  }
  func.func @transform_1(%arg0: i32, %arg1: i32) -> (i32, i32, i32, i32) {
    %c16_i32 = arith.constant 16 : i32
    %0 = arith.muli %arg1, %c16_i32 : i32
    %c1_i32 = arith.constant 1 : i32
    %1 = arith.subi %0, %c1_i32 : i32
    %c0_i32 = arith.constant 0 : i32
    %2 = arith.maxsi %1, %c0_i32 : i32
    %c0_i32_0 = arith.constant 0 : i32
    %c0_i32_1 = arith.constant 0 : i32
    %c0_i32_2 = arith.constant 0 : i32
    return %arg0, %2, %c0_i32_0, %c0_i32_1 : i32, i32, i32, i32
  }
  func.func @transform_2(%arg0: i32, %arg1: i32) -> (i32, i32, i32, i32) {
    %c1_i32 = arith.constant 1 : i32
    %0 = arith.addi %arg1, %c1_i32 : i32
    %c16_i32 = arith.constant 16 : i32
    %1 = arith.muli %0, %c16_i32 : i32
    %c15_i32 = arith.constant 15 : i32
    %2 = arith.minsi %1, %c15_i32 : i32
    %c0_i32 = arith.constant 0 : i32
    %c0_i32_0 = arith.constant 0 : i32
    %c0_i32_1 = arith.constant 0 : i32
    return %arg0, %2, %c0_i32, %c0_i32_0 : i32, i32, i32, i32
  }
  func.func @transform_3(%arg0: i32, %arg1: i32) -> (i32, i32) {
    %c0_i32 = arith.constant 0 : i32
    %c0_i32_0 = arith.constant 0 : i32
    %c0_i32_1 = arith.constant 0 : i32
    return %c0_i32, %c0_i32_0 : i32, i32
  }
  func.func @transform_4(%arg0: i32, %arg1: i32) -> (i32, i32) {
    %c0_i32 = arith.constant 0 : i32
    %c0_i32_0 = arith.constant 0 : i32
    %c0_i32_1 = arith.constant 0 : i32
    return %c0_i32, %c0_i32_0 : i32, i32
  }
  func.func @transform_5(%arg0: i32, %arg1: i32) -> (i32, i32, i32) {
    %c0_i32 = arith.constant 0 : i32
    %c0_i32_0 = arith.constant 0 : i32
    %c0_i32_1 = arith.constant 0 : i32
    %c0_i32_2 = arith.constant 0 : i32
    return %c0_i32, %c0_i32_0, %c0_i32_1 : i32, i32, i32
  }
  func.func @transform_6(%arg0: i32, %arg1: i32) -> (i32, i32) {
    %c0_i32 = arith.constant 0 : i32
    %c0_i32_0 = arith.constant 0 : i32
    %c0_i32_1 = arith.constant 0 : i32
    return %c0_i32, %c0_i32_0 : i32, i32
  }
  func.func @transform_7(%arg0: i32, %arg1: i32) -> (i32, i32) {
    %c0_i32 = arith.constant 0 : i32
    %c0_i32_0 = arith.constant 0 : i32
    %c0_i32_1 = arith.constant 0 : i32
    return %c0_i32, %c0_i32_0 : i32, i32
  }
  func.func @transform_8(%arg0: i32, %arg1: i32) -> (i32, i32) {
    %c0_i32 = arith.constant 0 : i32
    %c0_i32_0 = arith.constant 0 : i32
    %c0_i32_1 = arith.constant 0 : i32
    return %c0_i32, %c0_i32_0 : i32, i32
  }
  func.func @transform_9(%arg0: i32, %arg1: i32) -> (i32, i32, i32, i32) {
    %c0_i32 = arith.constant 0 : i32
    %c0_i32_0 = arith.constant 0 : i32
    %c0_i32_1 = arith.constant 0 : i32
    return %arg0, %arg1, %c0_i32, %c0_i32_0 : i32, i32, i32, i32
  }
}

</mosaic_0001>

<bundles_post_ra>
// kernel: bottleneck_forward.1
= control target key start
LH: loop header
LB: loop body
LE: loop exit
PB: predicated region body
PF: predicated region fallthrough
CT: control target
= control target key end

     0   :  { %s4149_s30 = smov 0   ;;  %s4151_s10 = smov 0   ;;  %s4855_s0 = inlined_call_operand.vmem [shape: bf16[2,16,16,16], index: 0, kind: input, shape index: {}, may-alias: {0,1,2}]   ;;  %s4856_s1 = inlined_call_operand.vmem [shape: bf16[2,16,16,16], index: 1, kind: input, shape index: {}, may-alias: {0,1,2}]   ;;  %s4857_s2 = inlined_call_operand.vmem [shape: bf16[2,16,16,16], index: 2, kind: input, shape index: {}, may-alias: {0,1,2}]   ;;  %s4858_s3 = inlined_call_operand.vmem [shape: bf16[16,4], index: 3, kind: input, shape index: {}]   ;;  %s4859_s4 = inlined_call_operand.vmem [shape: f32[1,4], index: 4, kind: input, shape index: {}]   ;;  %s4860_s5 = inlined_call_operand.vmem [shape: bf16[3,12,4], index: 5, kind: input, shape index: {}]   ;;  %s4861_s6 = inlined_call_operand.vmem [shape: f32[1,4], index: 6, kind: input, shape index: {}]   ;;  %s4862_s7 = inlined_call_operand.vmem [shape: bf16[4,16], index: 7, kind: input, shape index: {}]   ;;  %s4863_s8 = inlined_call_operand.vmem [shape: f32[1,16], index: 8, kind: input, shape index: {}]   ;;  %s4864_s9 = inlined_call_operand.vmem [shape: bf16[2,16,16,16], index: 9, kind: output, shape index: {}]  }
   0x1   :  { %s4153_s11 = smov 0  }
   0x2 LB: > { %s31_s12 = sadd.s32 1, %s4089_s10  ;;  %p3350_p0 = scmp.ge.s32.totalorder %s4093_s11, 1  ;;  %s4093_s11 = sphi %s4153_s11, %s19_s11   ;;  %s4089_s10 = sphi %s4151_s10, %s4870_s10   ;;  %s4085_s30 = sphi %s4149_s30, %s4869_s30  }
   0x3   : > { %p33_p1 = scmp.ge.s32.totalorder %s31_s12, 2  ;;  %p373_p2 = scmp.lt.s32.totalorder %s4093_s11, 3 }
   0x5   : > { %s4872_s12 = smov (%p33_p1, %s31_s12), 0  ;;  %p374_p3 = pnand %p3350_p0, %p373_p2 }
   0x6   : > { %p446_p4 = scmp.lt.s32.totalorder (!%p374_p3), %s4085_s30, 1  ;;  %s4096_s13 = smov (!%p374_p3), 8  }
   0x7   : > { %377 = sbr.rel (%p374_p3) target bundleno = 907 (0x38b), region = 56 }
   0xc   : > { %v4001_v0 = vld [vmem:[%s4858_s3] sm:$0xff]   ;;  %s4874_s30 = smov (!%p446_p4, %s4085_s30), 1  ;;  %vm643_vm0 = vcmask 130048   ;;  %v4020_v19 = vld [vmem:[%s4860_s5 + $0x8] sm:$0x3f]   ;;  %vm1784_vm1 = vcmask 1045504  }
   0xd   : > { %3792 = vmatprep.subr.bf16.mxu0 %v4001_v0  ;;  %s4170_s15 = sshll.u32 %s4874_s30, 7  ;;  %v4226_v21 = vld [vmem:[%s4859_s4] ss:$0 sm:$0xff]  ;;  %v1786_v22 = vsel %vm1784_vm1, %v4020_v19, 0  ;;  %3969 = vmatprep.subr.msk.bf16.mxu1 %vm1784_vm1, %v4020_v19  ;;  %s4095_s30 = smov 4   ;;  %vm1196_vm2 = vcmask 1047552  }
   0xe   : > { %3793 = vmatpush3.bf16.msra.mxu0 %v4001_v0  ;;  %s4176_s18 = scalar_lea.vmem %s4855_s0, %s4170_s15  ;;  %s468_s21 = scalar_lea.vmem %s4856_s1, %s4170_s15  ;;  %3967 = vmatpush3.bf16.msra.mxu1 %v1786_v22  ;;  %vm1197_vm3 = vsmask.f32 7424  ;;  %vm1121_vm5 = vcmask 1040384   ;;  %vm1122_vm6 = vsmask.f32 256  ;;  %vm1325_vm8 = vcmask 31744  }
   0xf   : > { %v4002_v1 = vld [vmem:[%s468_s21] sm:$0xff]   ;;  %v4004_v3 = vld [vmem:[%s4176_s18 + $0x8] sm:$0xff]   ;;  %v4005_v4 = vld [vmem:[%s4176_s18 + $0x10] sm:$0xff]   ;;  %s3591_s22 = sadd.s32 120, %s4170_s15  ;;  %3968 = vmatprep.subr.msk.bf16.mxu0 %vm1784_vm1, %v4020_v19  ;;  %vm1380_vm9 = vcmask 64512   ;;  %vm1543_vm10 = vcmask 93184   ;;  %s4739_s28 = scalar_lea.vmem %s4864_s9, %s4170_s15 }
  0x10   : > { %v4003_v2 = vld [vmem:[%s4176_s18] sm:$0xff]   ;;  %3794 = vmatprep.mubr.msk.bf16.mxu0 %vm643_vm0, %v4002_v1  ;;  %v4006_v5 = vld [vmem:[%s4176_s18 + $0x18] sm:$0xff]   ;;  %v4008_v7 = vld [vmem:[%s4176_s18 + $0x28] sm:$0xff]   ;;  %s485_s25 = scalar_lea.vmem %s4857_s2, %s3591_s22  ;;  %vm1735_vm11 = vcmask 97280   ;;  %vm2754_vm12 = vcmask 1041408   ;;  %vm3175_vm13 = vcmask 125952  }
  0x11   : > { %3795 = vmatmul.mubr.msk.bf16.vlgmr.msra.gmra.mxu0 %vm643_vm0, %v4003_v2  ;;  %v4007_v6 = vld [vmem:[%s4176_s18 + $0x20] sm:$0xff]   ;;  %v4009_v8 = vld [vmem:[%s4176_s18 + $0x30] sm:$0xff]   ;;  %v4010_v9 = vld [vmem:[%s4176_s18 + $0x38] sm:$0xff]  }
  0x12   : > { %3798 = vmatprep.mubr.msk.bf16.mxu0 %vm643_vm0, %v4004_v3  ;;  %v4011_v10 = vld [vmem:[%s4176_s18 + $0x40] sm:$0xff]   ;;  %v4012_v11 = vld [vmem:[%s4176_s18 + $0x48] sm:$0xff]   ;;  %v4013_v12 = vld [vmem:[%s4176_s18 + $0x50] sm:$0xff]   ;;  %3831 = vmatpush3.bf16.msra.mxu0 %v1786_v22 }
  0x13   : > { %v4014_v13 = vld [vmem:[%s4176_s18 + $0x58] sm:$0xff]   ;;  %v4015_v14 = vld [vmem:[%s4176_s18 + $0x60] sm:$0xff]   ;;  %v4016_v15 = vld [vmem:[%s4176_s18 + $0x68] sm:$0xff]  }
  0x14   : > { %v4017_v16 = vld [vmem:[%s4176_s18 + $0x70] sm:$0xff]   ;;  %v4018_v17 = vld [vmem:[%s4176_s18 + $0x78] sm:$0xff]   ;;  %v4019_v18 = vld [vmem:[%s485_s25] sm:$0xff]  }
  0x15   : > { %vm4237_vm4 = vmand %vm1196_vm2, %vm1197_vm3 }
  0x16   : > { %vm4423_vm7 = vmand %vm1121_vm5, %vm1122_vm6 }
  0x19   : > { %3799 = vmatmul.mubr.msk.bf16.gmra.mxu0 %vm643_vm0, %v4005_v4 }
  0x1a   : > { %3802 = vmatprep.mubr.msk.bf16.mxu0 %vm643_vm0, %v4006_v5 }
  0x21   : > { %3803 = vmatmul.mubr.msk.bf16.gmra.mxu0 %vm643_vm0, %v4007_v6 }
  0x22   : > { %3806 = vmatprep.mubr.msk.bf16.mxu0 %vm643_vm0, %v4008_v7 }
  0x29   : > { %3807 = vmatmul.mubr.msk.bf16.gmra.mxu0 %vm643_vm0, %v4009_v8 }
  0x2a   : > { %3810 = vmatprep.mubr.msk.bf16.mxu0 %vm643_vm0, %v4010_v9 }
  0x31   : > { %3811 = vmatmul.mubr.msk.bf16.gmra.mxu0 %vm643_vm0, %v4011_v10 }
  0x32   : > { %3814 = vmatprep.mubr.msk.bf16.mxu0 %vm643_vm0, %v4012_v11 }
  0x39   : > { %3815 = vmatmul.mubr.msk.bf16.gmra.mxu0 %vm643_vm0, %v4013_v12 }
  0x3a   : > { %3818 = vmatprep.mubr.msk.bf16.mxu0 %vm643_vm0, %v4014_v13 }
  0x41   : > { %3819 = vmatmul.mubr.msk.bf16.gmra.mxu0 %vm643_vm0, %v4015_v14 }
  0x42   : > { %3822 = vmatprep.mubr.msk.bf16.mxu0 %vm643_vm0, %v4016_v15 }
  0x49   : > { %3823 = vmatmul.mubr.msk.bf16.gmra.mxu0 %vm643_vm0, %v4017_v16 }
  0x4a   : > { %3826 = vmatprep.mubr.msk.bf16.mxu0 %vm643_vm0, %v4018_v17 }
  0x51   : > { %3827 = vmatmul.mubr.msk.bf16.gmra.mxu0 %vm643_vm0, %v4019_v18 }
  0xd1   : > { %v3796_v20 = vpop.f32.mrf.mxu0 }
  0xd2   : > { %v741_v24 = vadd.f32 %v3796_v20, %v4226_v21 }
  0xd3   : > { %v732_v23 = vpop.f32.mrf.mxu0 }
  0xd4   : > { %v877_v28 = vmax.f32 %v741_v24, 0.0 }
  0xd5   : > { %v3797_v25 = vpop.f32.mrf.mxu0 }
  0xd6   : > { %v744_v26 = vadd.f32 %v3797_v25, %v4226_v21 }
  0xd7   : > { %v735_v27 = vpop.f32.mrf.mxu0 }
  0xd8   : > { %v878_v29 = vmax.f32 %v744_v26, 0.0 }
  0xd9   : > { %v3800_v30 = vpop.f32.mrf.mxu0 }
  0xda   : > { %v960_v31 = vpack.c.bf16 %v878_v29, %v877_v28  ;;  %v757_v32 = vadd.f32 %v3800_v30, %v4226_v21 }
  0xdb   : > { %v748_v33 = vpop.f32.mrf.mxu0 }
  0xdc   : > { %1237 = vrot.lane.b32.xlu1 %v960_v31, %s4095_s30  ;;  %v985_v34 = vshrl.u32 %v960_v31, 16  ;;  %v988_v35 = vshll.u32 %v960_v31, 16  ;;  %v749_v37 = vadd.f32 %v4226_v21, %v748_v33  ;;  %v881_v41 = vmax.f32 %v757_v32, 0.0 }
  0xdd   : > { %v3801_v36 = vpop.f32.mrf.mxu0 }
  0xde   : > { %v760_v38 = vadd.f32 %v3801_v36, %v4226_v21  ;;  %v1144_v39 = vrot.slane %v988_v35, 1  ;;  %v987_v40 = vrot.slane %v985_v34, 7  ;;  %v879_v49 = vmax.f32 %v749_v37, 0.0 }
  0xdf   : > { %v751_v42 = vpop.f32.mrf.mxu0 }
  0xe0   : > { %v882_v44 = vmax.f32 %v760_v38, 0.0  ;;  %v752_v45 = vadd.f32 %v4226_v21, %v751_v42  ;;  %v1145_v46 = vor.u32 %v1144_v39, %v985_v34  ;;  %v4242_v47 = vor.u32 %v988_v35, %v987_v40 }
  0xe1   : > { %v3804_v48 = vpop.f32.mrf.mxu0 }
  0xe2   : > { %v962_v50 = vpack.c.bf16 %v882_v44, %v881_v41  ;;  %v880_v51 = vmax.f32 %v752_v45, 0.0  ;;  %v1200_v52 = vsel %vm4237_vm4, %v1145_v46, 0  ;;  %v773_v53 = vadd.f32 %v3804_v48, %v4226_v21 }
  0xe3   : > { %1291 = vrot.lane.b32.xlu0 %v1200_v52, %s4096_s13  ;;  %v764_v54 = vpop.f32.mrf.mxu0 }
  0xe4   : > { %v1002_v55 = vshll.u32 %v962_v50, 16  ;;  %v961_v56 = vpack.c.bf16 %v880_v51, %v879_v49  ;;  %1241 = vrot.lane.b32.xlu1 %v962_v50, %s4095_s30  ;;  %v999_v58 = vshrl.u32 %v962_v50, 16  ;;  %v765_v60 = vadd.f32 %v4226_v21, %v764_v54 }
  0xe5   : > { %v3805_v57 = vpop.f32.mrf.mxu0  ;;  %v885_v63 = vmax.f32 %v773_v53, 0.0 }
  0xe6   : > { %v995_v59 = vshll.u32 %v961_v56, 16  ;;  %v776_v61 = vadd.f32 %v3805_v57, %v4226_v21  ;;  %v1148_v62 = vrot.slane %v1002_v55, 1  ;;  %v1001_v1 = vrot.slane %v999_v58, 7 }
  0xe7   : > { %v767_v0 = vpop.f32.mrf.mxu0  ;;  %v992_v2 = vshrl.u32 %v961_v56, 16  ;;  %v883_v10 = vmax.f32 %v765_v60, 0.0 }
  0xe8   : > { %v886_v3 = vmax.f32 %v776_v61, 0.0  ;;  %v768_v4 = vadd.f32 %v4226_v21, %v767_v0  ;;  %1239 = vrot.lane.b32.xlu1 %v961_v56, %s4095_s30  ;;  %v1149_v5 = vor.u32 %v1148_v62, %v999_v58  ;;  %v1146_v6 = vrot.slane %v995_v59, 1 }
  0xe9   : > { %v3808_v7 = vpop.f32.mrf.mxu0  ;;  %v994_v8 = vrot.slane %v992_v2, 7  ;;  %v4253_v9 = vor.u32 %v1002_v55, %v1001_v1 }
  0xea   : > { %v4255_v11 = vpack.c.bf16 %v886_v3, %v885_v63  ;;  %v884_v12 = vmax.f32 %v768_v4, 0.0  ;;  %v1202_v13 = vsel %vm4237_vm4, %v1149_v5, 0  ;;  %v1147_v15 = vor.u32 %v1146_v6, %v992_v2 }
  0xeb   : > { %1295 = vrot.lane.b32.xlu0 %v1202_v13, %s4096_s13  ;;  %v780_v14 = vpop.f32.mrf.mxu0  ;;  %v4260_v16 = vor.u32 %v995_v59, %v994_v8  ;;  %v789_v18 = vadd.f32 %v3808_v7, %v4226_v21 }
  0xec   : > { %v4262_v17 = vpack.c.bf16 %v884_v12, %v883_v10  ;;  %v1201_v20 = vsel %vm4237_vm4, %v1147_v15, 0  ;;  %v1013_v22 = vshrl.u32 %v4255_v11, 16  ;;  %v781_v23 = vadd.f32 %v4226_v21, %v780_v14 }
  0xed   : > { %v3809_v19 = vpop.f32.mrf.mxu0  ;;  %1293 = vrot.lane.b32.xlu1 %v1201_v20, %s4096_s13  ;;  %v1016_v26 = vshll.u32 %v4255_v11, 16  ;;  %v889_v29 = vmax.f32 %v789_v18, 0.0 }
  0xee   : > { %v792_v24 = vadd.f32 %v3809_v19, %v4226_v21  ;;  %v1006_v25 = vshrl.u32 %v4262_v17, 16  ;;  %v1015_v28 = vrot.slane %v1013_v22, 7  ;;  %v1009_v33 = vshll.u32 %v4262_v17, 16 }
  0xef   : > { %v783_v27 = vpop.f32.mrf.mxu0  ;;  %v887_v36 = vmax.f32 %v781_v23, 0.0 }
  0xf0   : > { %v890_v30 = vmax.f32 %v792_v24, 0.0  ;;  %v784_v31 = vadd.f32 %v4226_v21, %v783_v27  ;;  %v1008_v32 = vrot.slane %v1006_v25, 7  ;;  %v4281_v35 = vor.u32 %v1016_v26, %v1015_v28 }
  0xf1   : > { %v3812_v34 = vpop.f32.mrf.mxu0  ;;  %1243 = vrot.lane.b32.xlu1 %v4262_v17, %s4095_s30 }
  0xf2   : > { %v966_v37 = vpack.c.bf16 %v890_v30, %v889_v29  ;;  %v888_v38 = vmax.f32 %v784_v31, 0.0  ;;  %v4287_v40 = vor.u32 %v1009_v33, %v1008_v32  ;;  %v805_v44 = vadd.f32 %v3812_v34, %v4226_v21 }
  0xf3   : > { %v796_v39 = vpop.f32.mrf.mxu0 }
  0xf4   : > { %v1030_v41 = vshll.u32 %v966_v37, 16  ;;  %v4289_v42 = vpack.c.bf16 %v888_v38, %v887_v36  ;;  %1249 = vrot.lane.b32.xlu0 %v966_v37, %s4095_s30  ;;  %v1027_v46 = vshrl.u32 %v966_v37, 16  ;;  %v797_v48 = vadd.f32 %v4226_v21, %v796_v39 }
  0xf5   : > { %v3813_v45 = vpop.f32.mrf.mxu0  ;;  %v893_v54 = vmax.f32 %v805_v44, 0.0 }
  0xf6   : > { %v808_v49 = vadd.f32 %v3813_v45, %v4226_v21  ;;  %v1156_v50 = vrot.slane %v1030_v41, 1  ;;  %v1029_v52 = vrot.slane %v1027_v46, 7  ;;  %v1020_v53 = vshrl.u32 %v4289_v42, 16 }
  0xf7   : > { %v799_v51 = vpop.f32.mrf.mxu0  ;;  %v1023_v58 = vshll.u32 %v4289_v42, 16  ;;  %v891_v62 = vmax.f32 %v797_v48, 0.0 }
  0xf8   : > { %v894_v55 = vmax.f32 %v808_v49, 0.0  ;;  %v800_v56 = vadd.f32 %v4226_v21, %v799_v51  ;;  %v1157_v57 = vor.u32 %v1156_v50, %v1027_v46  ;;  %v1022_v60 = vrot.slane %v1020_v53, 7 }
  0xf9   : > { %v3816_v59 = vpop.f32.mrf.mxu0  ;;  %v4300_v61 = vor.u32 %v1030_v41, %v1029_v52 }
  0xfa   : > { %v968_v63 = vpack.c.bf16 %v894_v55, %v893_v54  ;;  %v892_v0 = vmax.f32 %v800_v56, 0.0  ;;  %v1206_v1 = vsel %vm4237_vm4, %v1157_v57, 0  ;;  %v821_v2 = vadd.f32 %v3816_v59, %v4226_v21 }
  0xfb   : > { %v812_v3 = vpop.f32.mrf.mxu0  ;;  %1303 = vrot.lane.b32.xlu1 %v1206_v1, %s4096_s13  ;;  %v4308_v4 = vor.u32 %v1023_v58, %v1022_v60 }
  0xfc   : > { %v1044_v5 = vshll.u32 %v968_v63, 16  ;;  %v967_v6 = vpack.c.bf16 %v892_v0, %v891_v62  ;;  %1253 = vrot.lane.b32.xlu0 %v968_v63, %s4095_s30  ;;  %v1041_v8 = vshrl.u32 %v968_v63, 16  ;;  %v813_v12 = vadd.f32 %v4226_v21, %v812_v3 }
  0xfd   : > { %v3817_v7 = vpop.f32.mrf.mxu0  ;;  %v897_v15 = vmax.f32 %v821_v2, 0.0 }
  0xfe   : > { %v1037_v10 = vshll.u32 %v967_v6, 16  ;;  %v824_v13 = vadd.f32 %v3817_v7, %v4226_v21  ;;  %v1160_v14 = vrot.slane %v1044_v5, 1  ;;  %v1043_v19 = vrot.slane %v1041_v8, 7 }
  0xff   : > { %v815_v18 = vpop.f32.mrf.mxu0  ;;  %v1034_v20 = vshrl.u32 %v967_v6, 16  ;;  %v895_v32 = vmax.f32 %v813_v12, 0.0 }
 0x100   : > { %v898_v23 = vmax.f32 %v824_v13, 0.0  ;;  %v816_v24 = vadd.f32 %v4226_v21, %v815_v18  ;;  %1251 = vrot.lane.b32.xlu0 %v967_v6, %s4095_s30  ;;  %v1161_v27 = vor.u32 %v1160_v14, %v1041_v8  ;;  %v1158_v28 = vrot.slane %v1037_v10, 1  ;;  %v4341_v14 = vld [vmem:[%s4860_s5] sm:$0x3f]  }
 0x101   : > { %v3820_v29 = vpop.f32.mrf.mxu0  ;;  %v1036_v30 = vrot.slane %v1034_v20, 7  ;;  %v4315_v31 = vor.u32 %v1044_v5, %v1043_v19  ;;  %v1150_v6 = vrot.slane %v1009_v33, 1  ;;  %3970 = vmatprep.subr.msk.bf16.mxu1 %vm1784_vm1, %v4341_v14 }
 0x102   : > { %v970_v34 = vpack.c.bf16 %v898_v23, %v897_v15  ;;  %v896_v36 = vmax.f32 %v816_v24, 0.0  ;;  %v1208_v37 = vsel %vm4237_vm4, %v1161_v27, 0  ;;  %v837_v38 = vadd.f32 %v3820_v29, %v4226_v21 }
 0x103   : > { %v828_v39 = vpop.f32.mrf.mxu0  ;;  %v1159_v41 = vor.u32 %v1158_v28, %v1034_v20  ;;  %v4320_v44 = vor.u32 %v1037_v10, %v1036_v30  ;;  %v1151_v28 = vor.u32 %v1150_v6, %v1006_v25 }
 0x104   : > { %v1058_v45 = vshll.u32 %v970_v34, 16  ;;  %v969_v46 = vpack.c.bf16 %v896_v36, %v895_v32  ;;  %1307 = vrot.lane.b32.xlu0 %v1208_v37, %s4096_s13  ;;  %v829_v48 = vadd.f32 %v4226_v21, %v828_v39  ;;  %v1055_v51 = vshrl.u32 %v970_v34, 16 }
 0x105   : > { %v3821_v49 = vpop.f32.mrf.mxu0  ;;  %v1207_v50 = vsel %vm4237_vm4, %v1159_v41, 0  ;;  %v901_v56 = vmax.f32 %v837_v38, 0.0 }
 0x106   : > { %v1051_v52 = vshll.u32 %v969_v46, 16  ;;  %v840_v54 = vadd.f32 %v3821_v49, %v4226_v21  ;;  %1305 = vrot.lane.b32.xlu1 %v1207_v50, %s4096_s13  ;;  %v1164_v55 = vrot.slane %v1058_v45, 1  ;;  %v1057_v59 = vrot.slane %v1055_v51, 7 }
 0x107   : > { %v831_v57 = vpop.f32.mrf.mxu0  ;;  %v1048_v60 = vshrl.u32 %v969_v46, 16  ;;  %v899_v2 = vmax.f32 %v829_v48, 0.0  ;;  %v1203_v48 = vsel %vm4237_vm4, %v1151_v28, 0 }
 0x108   : > { %v902_v62 = vmax.f32 %v840_v54, 0.0  ;;  %v832_v63 = vadd.f32 %v4226_v21, %v831_v57  ;;  %1257 = vrot.lane.b32.xlu0 %v970_v34, %s4095_s30  ;;  %v1165_v0 = vor.u32 %v1164_v55, %v1055_v51  ;;  %v1162_v1 = vrot.slane %v1051_v52, 1 }
 0x109   : > { %v3824_v3 = vpop.f32.mrf.mxu0  ;;  %v1050_v5 = vrot.slane %v1048_v60, 7  ;;  %v4332_v7 = vor.u32 %v1058_v45, %v1057_v59 }
 0x10a   : > { %v972_v8 = vpack.c.bf16 %v902_v62, %v901_v56  ;;  %v900_v10 = vmax.f32 %v832_v63, 0.0  ;;  %v853_v12 = vadd.f32 %v3824_v3, %v4226_v21  ;;  %1255 = vrot.lane.b32.xlu1 %v969_v46, %s4095_s30  ;;  %v1210_v13 = vsel %vm4237_vm4, %v1165_v0, 0 }
 0x10b   : > { %v844_v15 = vpop.f32.mrf.mxu0  ;;  %v1163_v18 = vor.u32 %v1162_v1, %v1048_v60  ;;  %v4343_v19 = vor.u32 %v1051_v52, %v1050_v5 }
 0x10c   : > { %v1072_v33 = vshll.u32 %v972_v8, 16  ;;  %v971_v20 = vpack.c.bf16 %v900_v10, %v899_v2  ;;  %1311 = vrot.lane.b32.xlu0 %v1210_v13, %s4096_s13  ;;  %v905_v23 = vmax.f32 %v853_v12, 0.0  ;;  %v1069_v29 = vshrl.u32 %v972_v8, 16 }
 0x10d   : > { %v3825_v24 = vpop.f32.mrf.mxu0  ;;  %v1209_v27 = vsel %vm4237_vm4, %v1163_v18, 0  ;;  %v845_v32 = vadd.f32 %v4226_v21, %v844_v15 }
 0x10e   : > { %v1065_v30 = vshll.u32 %v971_v20, 16  ;;  %v856_v34 = vadd.f32 %v3825_v24, %v4226_v21  ;;  %1309 = vrot.lane.b32.xlu1 %v1209_v27, %s4096_s13  ;;  %v1168_v36 = vrot.slane %v1072_v33, 1  ;;  %v1071_v38 = vrot.slane %v1069_v29, 7 }
 0x10f   : > { %v847_v37 = vpop.f32.mrf.mxu0  ;;  %v1062_v39 = vshrl.u32 %v971_v20, 16  ;;  %v903_v51 = vmax.f32 %v845_v32, 0.0 }
 0x110   : > { %v906_v41 = vmax.f32 %v856_v34, 0.0  ;;  %v848_v45 = vadd.f32 %v4226_v21, %v847_v37  ;;  %1261 = vrot.lane.b32.xlu0 %v972_v8, %s4095_s30  ;;  %v1169_v46 = vor.u32 %v1168_v36, %v1069_v29  ;;  %v1166_v17 = vrot.slane %v1065_v30, 1  ;;  %v4387_v36 = vld [vmem:[%s4860_s5 + $0x10] sm:$0x3f]  }
 0x111   : > { %v3828_v25 = vpop.f32.mrf.mxu0  ;;  %v1064_v49 = vrot.slane %v1062_v39, 7  ;;  %v4359_v50 = vor.u32 %v1072_v33, %v1071_v38  ;;  %v1154_v37 = vrot.slane %v1023_v58, 1  ;;  %3971 = vmatprep.subr.msk.bf16.mxu0 %vm1784_vm1, %v4387_v36 }
 0x112   : > { %v974_v52 = vpack.c.bf16 %v906_v41, %v905_v23  ;;  %v904_v54 = vmax.f32 %v848_v45, 0.0  ;;  %1297 = vrot.lane.b32.xlu1 %v1203_v48, %s4096_s13  ;;  %v1212_v55 = vsel %vm4237_vm4, %v1169_v46, 0  ;;  %v1167_v57 = vor.u32 %v1166_v17, %v1062_v39 }
 0x113   : > { %v860_v56 = vpop.f32.mrf.mxu0  ;;  %v4364_v59 = vor.u32 %v1065_v30, %v1064_v49  ;;  %v1152_v45 = vrot.slane %v1016_v26, 1  ;;  %v1155_v58 = vor.u32 %v1154_v37, %v1020_v53  ;;  %v4097_v25 = vmov 0  }
 0x114   : > { %v973_v60 = vpack.c.bf16 %v904_v54, %v903_v51  ;;  %1315 = vrot.lane.b32.xlu0 %v1212_v55, %s4096_s13  ;;  %v1083_v63 = vshrl.u32 %v974_v52, 16  ;;  %v861_v1 = vadd.f32 %v4226_v21, %v860_v56  ;;  %v1086_v3 = vshll.u32 %v974_v52, 16 }
 0x115   : > { %v3829_v62 = vpop.f32.mrf.mxu0  ;;  %v1211_v6 = vsel %vm4237_vm4, %v1167_v57, 0  ;;  %v1153_v17 = vor.u32 %v1152_v45, %v1013_v22  ;;  %v1142_v48 = vrot.slane %v4097_v25, 1  ;;  %v1205_v26 = vsel %vm4237_vm4, %v1155_v58, 0 }
 0x116   : > { %v1079_v0 = vshll.u32 %v973_v60, 16  ;;  %1259 = vrot.lane.b32.xlu1 %v971_v20, %s4095_s30  ;;  %v1076_v2 = vshrl.u32 %v973_v60, 16  ;;  %v1085_v8 = vrot.slane %v1083_v63, 7  ;;  %v907_v18 = vmax.f32 %v861_v1, 0.0 }
 0x117   : > { %v863_v5 = vpop.f32.mrf.mxu0  ;;  %v1172_v24 = vrot.slane %v1086_v3, 1  ;;  %v1199_v53 = vsel %vm4237_vm4, %v1142_v48, 0  ;;  %v1125_v49 = vsel %vm4423_vm7, 0, %v4242_v47  ;;  %v1127_v62 = vsel %vm4423_vm7, 0, %v4253_v9 }
 0x118   : > { %v864_v10 = vadd.f32 %v4226_v21, %v863_v5  ;;  %1313 = vrot.lane.b32.xlu0 %v1211_v6, %s4096_s13  ;;  %v1078_v12 = vrot.slane %v1076_v2, 7  ;;  %v1170_v13 = vrot.slane %v1079_v0, 1  ;;  %v4373_v15 = vor.u32 %v1086_v3, %v1085_v8 }
 0x119   : > { %v1173_v30 = vor.u32 %v1172_v24, %v1083_v63  ;;  %v1126_v1 = vsel %vm4423_vm7, 0, %v4260_v16 }
 0x11a   : > { %v908_v33 = vmax.f32 %v864_v10, 0.0  ;;  %1263 = vrot.lane.b32.xlu1 %v973_v60, %s4095_s30  ;;  %v4376_v20 = vor.u32 %v1079_v0, %v1078_v12  ;;  %v1171_v23 = vor.u32 %v1170_v13, %v1076_v2 }
 0x11b   : > { %v1214_v39 = vsel %vm4237_vm4, %v1173_v30, 0 }
 0x11c   : > { %v975_v27 = vpack.c.bf16 %v908_v33, %v907_v18  ;;  %1265 = vrot.lane.b32.xlu0 %v974_v52, %s4095_s30  ;;  %v1213_v29 = vsel %vm4237_vm4, %v1171_v23, 0  ;;  %v2416_v33 = vsel %vm1784_vm1, %v4387_v36, 0  ;;  %v1131_v23 = vsel %vm4423_vm7, 0, %v4300_v61 }
 0x11d   : > { %v1133_v61 = vsel %vm4423_vm7, 0, %v4315_v31 }
 0x11e   : > { %v1093_v28 = vshll.u32 %v975_v27, 16  ;;  %1245 = vrot.lane.b32.xlu1 %v4255_v11, %s4095_s30  ;;  %v1090_v21 = vshrl.u32 %v975_v27, 16  ;;  %v4098_v11 = vmov 0.0|0.0  }
 0x120   : > { %1317 = vrot.lane.b32.xlu0 %v1213_v29, %s4096_s13  ;;  %v1092_v32 = vrot.slane %v1090_v21, 7  ;;  %v1174_v34 = vrot.slane %v1093_v28, 1 }
 0x122   : > { %1247 = vrot.lane.b32.xlu1 %v4289_v42, %s4095_s30  ;;  %v4393_v38 = vor.u32 %v1093_v28, %v1092_v32  ;;  %v1175_v41 = vor.u32 %v1174_v34, %v1090_v21  ;;  %v1204_v42 = vsel %vm4237_vm4, %v1153_v17, 0 }
 0x124   : > { %1319 = vrot.lane.b32.xlu0 %v1214_v39, %s4096_s13  ;;  %v1215_v46 = vsel %vm4237_vm4, %v1175_v41, 0  ;;  %v1132_v39 = vsel %vm4423_vm7, 0, %v4320_v44 }
 0x126   : > { %1267 = vrot.lane.b32.xlu1 %v975_v27, %s4095_s30 }
 0x128   : > { %1321 = vrot.lane.b32.xlu0 %v1215_v46, %s4096_s13 }
 0x12a   : > { %1301 = vrot.lane.b32.xlu1 %v1205_v26, %s4096_s13 }
 0x12c   : > { %1299 = vrot.lane.b32.xlu0 %v1204_v42, %s4096_s13 }
 0x12e   : > { %1289 = vrot.lane.b32.xlu1 %v1199_v53, %s4096_s13 }
 0x130   : > { %1235 = vrot.lane.b32.xlu0 %v4098_v11, %s4095_s30 }
 0x132   : > { %1323 = vrot.lane.b32.xlu1 %v1199_v53, %s4096_s13 }
 0x134   : > { %1269 = vrot.lane.b32.xlu0 %v4098_v11, %s4095_s30  ;;  %v1135_v11 = vsel %vm4423_vm7, 0, %v4332_v7  ;;  %v1128_v7 = vsel %vm4423_vm7, 0, %v4287_v40  ;;  %v1137_v40 = vsel %vm4423_vm7, 0, %v4359_v50 }
 0x14e   : > { %v1238_v43 = vpop.permute.xlu1 %1237 }
 0x14f   : > { %v1331_v51 = vsel %vm1325_vm8, %v1125_v49, %v1238_v43 }
 0x155   : > { %v1292_v52 = vpop.permute.xlu0 %1291 }
 0x156   : > { %v1384_v54 = vsel %vm1380_vm9, %v1331_v51, %v1292_v52  ;;  %v1242_v55 = vpop.permute.xlu1 %1241  ;;  %v1134_v51 = vsel %vm4423_vm7, 0, %v4343_v19 }
 0x157   : > { %v3399_v56 = vcombine.low %v1384_v54, %v1384_v54  ;;  %v3400_v57 = vcombine.high %v1384_v54, %v1384_v54  ;;  %v1337_v47 = vsel %vm1325_vm8, %v1127_v62, %v1242_v55 }
 0x159   : > { %1546 = vst.msk [vmem:[#allocation2 + $0x8] sm:$0xf] %vm1543_vm10, %v3399_v56  ;;  %1547 = vst.msk [vmem:[#allocation2 + $0xc] sm:$0xf] %vm1543_vm10, %v3400_v57 }
 0x15a   : > { %v1240_v60 = vpop.permute.xlu1 %1239 }
 0x15b   : > { %v1334_v5 = vsel %vm1325_vm8, %v1126_v1, %v1240_v60 }
 0x15d   : > { %v1296_v63 = vpop.permute.xlu0 %1295 }
 0x15e   : > { %v1388_v0 = vsel %vm1380_vm9, %v1337_v47, %v1296_v63 }
 0x15f   : > { %v3403_v2 = vcombine.low %v1388_v0, %v1388_v0  ;;  %v3404_v3 = vcombine.high %v1388_v0, %v1388_v0  ;;  %v1294_v6 = vpop.permute.xlu1 %1293  ;;  %v2083_v0 = vsel %vm1784_vm1, %v4341_v14, 0 }
 0x160   : > { %v4021_v8 = vld [vmem:[#allocation2 + $0x8] sm:$0xff]   ;;  %v1386_v9 = vsel %vm1380_vm9, %v1334_v5, %v1294_v6 }
 0x161   : > { %1550 = vst.msk [vmem:[#allocation2 + $0x18] sm:$0xf] %vm1543_vm10, %v3403_v2  ;;  %1551 = vst.msk [vmem:[#allocation2 + $0x1c] sm:$0xf] %vm1543_vm10, %v3404_v3  ;;  %v3401_v10 = vcombine.low %v1386_v9, %v1386_v9  ;;  %v3402_v12 = vcombine.high %v1386_v9, %v1386_v9  ;;  %3832 = vmatprep.mubr.msk.bf16.mxu0 %vm1735_vm11, %v4021_v8 }
 0x163   : > { %1548 = vst.msk [vmem:[#allocation2 + $0x10] sm:$0xf] %vm1543_vm10, %v3401_v10  ;;  %1549 = vst.msk [vmem:[#allocation2 + $0x14] sm:$0xf] %vm1543_vm10, %v3402_v12  ;;  %v1244_v16 = vpop.permute.xlu1 %1243 }
 0x164   : > { %v1340_v1 = vsel %vm1325_vm8, %v1128_v7, %v1244_v16 }
 0x166   : > { %v1250_v13 = vpop.permute.xlu0 %1249 }
 0x167   : > { %v1349_v27 = vsel %vm1325_vm8, %v1131_v23, %v1250_v13  ;;  %v1136_v13 = vsel %vm4423_vm7, 0, %v4364_v59 }
 0x168   : > { %v4023_v24 = vld [vmem:[#allocation2 + $0x18] sm:$0xff]  }
 0x16a   : > { %v4022_v18 = vld [vmem:[#allocation2 + $0x10] sm:$0xff]  }
 0x16b   : > { %3833 = vmatmul.mubr.msk.bf16.vlgmr.msra.gmra.mxu0 %vm1735_vm11, %v4022_v18 }
 0x16c   : > { %3836 = vmatprep.mubr.msk.bf16.mxu0 %vm1735_vm11, %v4023_v24  ;;  %3899 = vmatpush3.bf16.msra.mxu0 %v2416_v33 }
 0x16d   : > { %v1304_v28 = vpop.permute.xlu1 %1303 }
 0x16e   : > { %v1396_v21 = vsel %vm1380_vm9, %v1349_v27, %v1304_v28  ;;  %v1254_v29 = vpop.permute.xlu0 %1253 }
 0x16f   : > { %v3411_v30 = vcombine.low %v1396_v21, %v1396_v21  ;;  %v3412_v32 = vcombine.high %v1396_v21, %v1396_v21  ;;  %v1355_v36 = vsel %vm1325_vm8, %v1133_v61, %v1254_v29 }
 0x171   : > { %1558 = vst.msk [vmem:[#allocation2 + $0x38] sm:$0xf] %vm1543_vm10, %v3411_v30  ;;  %1559 = vst.msk [vmem:[#allocation2 + $0x3c] sm:$0xf] %vm1543_vm10, %v3412_v32 }
 0x172   : > { %v1252_v34 = vpop.permute.xlu0 %1251 }
 0x173   : > { %v1352_v45 = vsel %vm1325_vm8, %v1132_v39, %v1252_v34  ;;  %v1138_v34 = vsel %vm4423_vm7, 0, %v4376_v20 }
 0x176   : > { %v1308_v37 = vpop.permute.xlu0 %1307 }
 0x177   : > { %v1400_v41 = vsel %vm1380_vm9, %v1355_v36, %v1308_v37 }
 0x178   : > { %v3415_v58 = vcombine.low %v1400_v41, %v1400_v41  ;;  %v3416_v46 = vcombine.high %v1400_v41, %v1400_v41  ;;  %v1306_v17 = vpop.permute.xlu1 %1305  ;;  %v4024_v48 = vld [vmem:[#allocation2 + $0x38] sm:$0xff]  }
 0x179   : > { %v1398_v26 = vsel %vm1380_vm9, %v1352_v45, %v1306_v17  ;;  %3844 = vmatprep.mubr.msk.bf16.mxu1 %vm1735_vm11, %v4024_v48 }
 0x17a   : > { %1562 = vst.msk [vmem:[#allocation2 + $0x48] sm:$0xf] %vm1543_vm10, %v3415_v58  ;;  %1563 = vst.msk [vmem:[#allocation2 + $0x4c] sm:$0xf] %vm1543_vm10, %v3416_v46  ;;  %v3413_v31 = vcombine.low %v1398_v26, %v1398_v26  ;;  %v3414_v42 = vcombine.high %v1398_v26, %v1398_v26  ;;  %v1258_v53 = vpop.permute.xlu0 %1257  ;;  %v1139_v58 = vsel %vm4423_vm7, 0, %v4373_v15  ;;  %v1140_v15 = vsel %vm4423_vm7, 0, %v4393_v38 }
 0x17b   : > { %v1361_v43 = vsel %vm1325_vm8, %v1135_v11, %v1258_v53 }
 0x17c   : > { %1560 = vst.msk [vmem:[#allocation2 + $0x40] sm:$0xf] %vm1543_vm10, %v3413_v31  ;;  %1561 = vst.msk [vmem:[#allocation2 + $0x44] sm:$0xf] %vm1543_vm10, %v3414_v42  ;;  %v1256_v44 = vpop.permute.xlu1 %1255 }
 0x17d   : > { %v1358_v54 = vsel %vm1325_vm8, %v1134_v51, %v1256_v44  ;;  %v980_v51 = vrot.slane %v4097_v25, 7 }
 0x17e   : > { %v1312_v49 = vpop.permute.xlu0 %1311 }
 0x17f   : > { %v1404_v52 = vsel %vm1380_vm9, %v1361_v43, %v1312_v49  ;;  %v1130_v43 = vsel %vm4423_vm7, 0, %v4308_v4 }
 0x180   : > { %v3419_v55 = vcombine.low %v1404_v52, %v1404_v52  ;;  %v3420_v56 = vcombine.high %v1404_v52, %v1404_v52  ;;  %v1310_v57 = vpop.permute.xlu1 %1309 }
 0x181   : > { %v1402_v60 = vsel %vm1380_vm9, %v1358_v54, %v1310_v57  ;;  %v4026_v3 = vld [vmem:[#allocation2 + $0x48] sm:$0xff]  }
 0x182   : > { %1566 = vst.msk [vmem:[#allocation2 + $0x58] sm:$0xf] %vm1543_vm10, %v3419_v55  ;;  %1567 = vst.msk [vmem:[#allocation2 + $0x5c] sm:$0xf] %vm1543_vm10, %v3420_v56  ;;  %v3417_v62 = vcombine.low %v1402_v60, %v1402_v60  ;;  %v3418_v47 = vcombine.high %v1402_v60, %v1402_v60  ;;  %v1262_v19 = vpop.permute.xlu0 %1261  ;;  %v1129_v56 = vsel %vm4423_vm7, 0, %v4281_v35 }
 0x183   : > { %v4025_v63 = vld [vmem:[#allocation2 + $0x40] sm:$0xff]   ;;  %v1367_v6 = vsel %vm1325_vm8, %v1137_v40, %v1262_v19 }
 0x184   : > { %1564 = vst.msk [vmem:[#allocation2 + $0x50] sm:$0xf] %vm1543_vm10, %v3417_v62  ;;  %1565 = vst.msk [vmem:[#allocation2 + $0x54] sm:$0xf] %vm1543_vm10, %v3418_v47  ;;  %v1298_v2 = vpop.permute.xlu1 %1297  ;;  %3845 = vmatmul.mubr.msk.bf16.vlgmr.msra.gmra.mxu1 %vm1735_vm11, %v4025_v63  ;;  %v1124_v63 = vsel %vm4423_vm7, 0, %v980_v51 }
 0x185   : > { %v1390_v5 = vsel %vm1380_vm9, %v1340_v1, %v1298_v2  ;;  %3848 = vmatprep.mubr.msk.bf16.mxu1 %vm1735_vm11, %v4026_v3  ;;  %3865 = vmatpush3.bf16.msra.mxu1 %v2083_v0 }
 0x186   : > { %v3405_v8 = vcombine.low %v1390_v5, %v1390_v5  ;;  %v3406_v14 = vcombine.high %v1390_v5, %v1390_v5  ;;  %v1316_v9 = vpop.permute.xlu0 %1315 }
 0x187   : > { %v1408_v10 = vsel %vm1380_vm9, %v1367_v6, %v1316_v9 }
 0x188   : > { %1552 = vst.msk [vmem:[#allocation2 + $0x20] sm:$0xf] %vm1543_vm10, %v3405_v8  ;;  %1553 = vst.msk [vmem:[#allocation2 + $0x24] sm:$0xf] %vm1543_vm10, %v3406_v14  ;;  %v3423_v12 = vcombine.low %v1408_v10, %v1408_v10  ;;  %v3424_v50 = vcombine.high %v1408_v10, %v1408_v10  ;;  %v1260_v16 = vpop.permute.xlu1 %1259 }
 0x189   : > { %v1364_v18 = vsel %vm1325_vm8, %v1136_v13, %v1260_v16  ;;  %v4029_v29 = vld [vmem:[#allocation2 + $0x58] sm:$0xff]  }
 0x18a   : > { %1570 = vst.msk [vmem:[#allocation2 + $0x68] sm:$0xf] %vm1543_vm10, %v3423_v12  ;;  %1571 = vst.msk [vmem:[#allocation2 + $0x6c] sm:$0xf] %vm1543_vm10, %v3424_v50  ;;  %v1314_v33 = vpop.permute.xlu0 %1313 }
 0x18b   : > { %v1406_v23 = vsel %vm1380_vm9, %v1364_v18, %v1314_v33  ;;  %v4028_v24 = vld [vmem:[#allocation2 + $0x50] sm:$0xff]  }
 0x18c   : > { %v3421_v27 = vcombine.low %v1406_v23, %v1406_v23  ;;  %v3422_v28 = vcombine.high %v1406_v23, %v1406_v23  ;;  %v1264_v21 = vpop.permute.xlu1 %1263  ;;  %3849 = vmatmul.mubr.msk.bf16.gmra.mxu1 %vm1735_vm11, %v4028_v24  ;;  %v4039_v18 = vld [vmem:[#allocation2 + $0x10] sm:$0xff]   ;;  %v4041_v23 = vld [vmem:[#allocation2 + $0x8] sm:$0xff]  }
 0x18d   : > { %3852 = vmatprep.mubr.msk.bf16.mxu1 %vm1735_vm11, %v4029_v29  ;;  %v1370_v61 = vsel %vm1325_vm8, %v1138_v34, %v1264_v21  ;;  %v4042_v24 = vld [vmem:[#allocation2 + $0x10] sm:$0xff]   ;;  %v2698_v21 = vld [vmem:[%s4862_s7] sm:$0x3]  ;;  %v4045_v29 = vld [vmem:[#allocation2 + $0x18] sm:$0xff]  }
 0x18e   : > { %1568 = vst.msk [vmem:[#allocation2 + $0x60] sm:$0xf] %vm1543_vm10, %v3421_v27  ;;  %1569 = vst.msk [vmem:[#allocation2 + $0x64] sm:$0xf] %vm1543_vm10, %v3422_v28  ;;  %v1266_v59 = vpop.permute.xlu0 %1265  ;;  %v4043_v27 = vld [vmem:[#allocation2 + $0x18] sm:$0xff]   ;;  %3972 = vmatprep.subr.msk.bf16.mxu1 %vm2754_vm12, %v2698_v21 }
 0x18f   : > { %v4030_v30 = vld [vmem:[#allocation2 + $0x20] sm:$0xff]   ;;  %v1373_v17 = vsel %vm1325_vm8, %v1139_v58, %v1266_v59  ;;  %v4055_v58 = vld [vmem:[#allocation2 + $0x48] sm:$0xff]  }
 0x190   : > { %v1246_v32 = vpop.permute.xlu1 %1245  ;;  %3837 = vmatmul.mubr.msk.bf16.gmra.mxu0 %vm1735_vm11, %v4030_v30  ;;  %v4044_v28 = vld [vmem:[#allocation2 + $0x20] sm:$0xff]  }
 0x191   : > { %v4032_v48 = vld [vmem:[#allocation2 + $0x68] sm:$0xff]   ;;  %v1343_v7 = vsel %vm1325_vm8, %v1129_v56, %v1246_v32  ;;  %v4046_v59 = vld [vmem:[#allocation2 + $0x20] sm:$0xff]  }
 0x192   : > { %v1318_v36 = vpop.permute.xlu0 %1317 }
 0x193   : > { %v1410_v37 = vsel %vm1380_vm9, %v1370_v61, %v1318_v36  ;;  %v4051_v36 = vld [vmem:[#allocation2 + $0x38] sm:$0xff]  }
 0x194   : > { %v3425_v39 = vcombine.low %v1410_v37, %v1410_v37  ;;  %v3426_v41 = vcombine.high %v1410_v37, %v1410_v37  ;;  %v1248_v45 = vpop.permute.xlu1 %1247  ;;  %v4052_v37 = vld [vmem:[#allocation2 + $0x40] sm:$0xff]  }
 0x195   : > { %v4031_v46 = vld [vmem:[#allocation2 + $0x60] sm:$0xff]   ;;  %v1346_v52 = vsel %vm1325_vm8, %v1130_v43, %v1248_v45 }
 0x196   : > { %1572 = vst.msk [vmem:[#allocation2 + $0x70] sm:$0xf] %vm1543_vm10, %v3425_v39  ;;  %1573 = vst.msk [vmem:[#allocation2 + $0x74] sm:$0xf] %vm1543_vm10, %v3426_v41  ;;  %v1320_v20 = vpop.permute.xlu0 %1319  ;;  %3853 = vmatmul.mubr.msk.bf16.gmra.mxu1 %vm1735_vm11, %v4031_v46  ;;  %v2756_v39 = vsel %vm2754_vm12, %v2698_v21, 0  ;;  %v4053_v41 = vld [vmem:[#allocation2 + $0x38] sm:$0xff]  }
 0x197   : > { %v1412_v26 = vsel %vm1380_vm9, %v1373_v17, %v1320_v20  ;;  %3856 = vmatprep.mubr.msk.bf16.mxu1 %vm1735_vm11, %v4032_v48  ;;  %v4054_v45 = vld [vmem:[#allocation2 + $0x40] sm:$0xff]   ;;  %v4056_v46 = vld [vmem:[#allocation2 + $0x50] sm:$0xff]   ;;  %v4057_v17 = vld [vmem:[#allocation2 + $0x48] sm:$0xff]  }
 0x198   : > { %v3427_v31 = vcombine.low %v1412_v26, %v1412_v26  ;;  %v3428_v42 = vcombine.high %v1412_v26, %v1412_v26  ;;  %v1268_v53 = vpop.permute.xlu1 %1267  ;;  %v4058_v20 = vld [vmem:[#allocation2 + $0x50] sm:$0xff]   ;;  %v4059_v48 = vld [vmem:[#allocation2 + $0x58] sm:$0xff]   ;;  %v4060_v26 = vld [vmem:[#allocation2 + $0x60] sm:$0xff]  }
 0x199   : > { %v1376_v44 = vsel %vm1325_vm8, %v1140_v15, %v1268_v53  ;;  %v4063_v53 = vld [vmem:[#allocation2 + $0x68] sm:$0xff]  }
 0x19a   : > { %1574 = vst.msk [vmem:[#allocation2 + $0x78] sm:$0xf] %vm1543_vm10, %v3427_v31  ;;  %1575 = vst.msk [vmem:[#allocation2 + $0x7c] sm:$0xf] %vm1543_vm10, %v3428_v42  ;;  %v1322_v11 = vpop.permute.xlu0 %1321  ;;  %v4061_v31 = vld [vmem:[#allocation2 + $0x58] sm:$0xff]   ;;  %v4062_v42 = vld [vmem:[#allocation2 + $0x60] sm:$0xff]  }
 0x19b   : > { %v1414_v49 = vsel %vm1380_vm9, %v1376_v44, %v1322_v11  ;;  %v4065_v44 = vld [vmem:[#allocation2 + $0x68] sm:$0xff]  }
 0x19c   : > { %v3429_v54 = vcombine.low %v1414_v49, %v1414_v49  ;;  %v3430_v55 = vcombine.high %v1414_v49, %v1414_v49  ;;  %v1302_v38 = vpop.permute.xlu1 %1301 }
 0x19d   : > { %v1394_v57 = vsel %vm1380_vm9, %v1346_v52, %v1302_v38  ;;  %v4034_v60 = vld [vmem:[#allocation2 + $0x70] sm:$0xff]  }
 0x19e   : > { %1576 = vst.msk [vmem:[#allocation2 + $0x80] sm:$0xf] %vm1543_vm10, %v3429_v54  ;;  %1577 = vst.msk [vmem:[#allocation2 + $0x84] sm:$0xf] %vm1543_vm10, %v3430_v55  ;;  %v3409_v4 = vcombine.low %v1394_v57, %v1394_v57  ;;  %v3410_v25 = vcombine.high %v1394_v57, %v1394_v57  ;;  %v1300_v62 = vpop.permute.xlu0 %1299  ;;  %3857 = vmatmul.mubr.msk.bf16.gmra.mxu1 %vm1735_vm11, %v4034_v60  ;;  %v4064_v15 = vld [vmem:[#allocation2 + $0x70] sm:$0xff]  }
 0x19f   : > { %v1392_v47 = vsel %vm1380_vm9, %v1343_v7, %v1300_v62  ;;  %v4066_v11 = vld [vmem:[#allocation2 + $0x70] sm:$0xff]  }
 0x1a0   : > { %1556 = vst.msk [vmem:[#allocation2 + $0x30] sm:$0xf] %vm1543_vm10, %v3409_v4  ;;  %1557 = vst.msk [vmem:[#allocation2 + $0x34] sm:$0xf] %vm1543_vm10, %v3410_v25  ;;  %v3407_v35 = vcombine.low %v1392_v47, %v1392_v47  ;;  %v3408_v19 = vcombine.high %v1392_v47, %v1392_v47  ;;  %v1290_v0 = vpop.permute.xlu1 %1289 }
 0x1a1   : > { %v4035_v1 = vld [vmem:[#allocation2 + $0x78] sm:$0xff]  }
 0x1a2   : > { %1554 = vst.msk [vmem:[#allocation2 + $0x28] sm:$0xf] %vm1543_vm10, %v3407_v35  ;;  %1555 = vst.msk [vmem:[#allocation2 + $0x2c] sm:$0xf] %vm1543_vm10, %v3408_v19  ;;  %v1236_v2 = vpop.permute.xlu0 %1235  ;;  %3860 = vmatprep.mubr.msk.bf16.mxu1 %vm1735_vm11, %v4035_v1  ;;  %v4067_v43 = vld [vmem:[#allocation2 + $0x78] sm:$0xff]  }
 0x1a3   : > { %v1328_v3 = vsel %vm1325_vm8, %v1124_v63, %v1236_v2  ;;  %v4069_v51 = vld [vmem:[#allocation2 + $0x78] sm:$0xff]  }
 0x1a4   : > { %v1382_v40 = vsel %vm1380_vm9, %v1328_v3, %v1290_v0  ;;  %v1324_v14 = vpop.permute.xlu1 %1323 }
 0x1a5   : > { %v3397_v5 = vcombine.low %v1382_v40, %v1382_v40  ;;  %v3398_v6 = vcombine.high %v1382_v40, %v1382_v40  ;;  %v4036_v8 = vld [vmem:[#allocation2 + $0x80] sm:$0xff]  }
 0x1a6   : > { %v1270_v9 = vpop.permute.xlu0 %1269  ;;  %3861 = vmatmul.mubr.msk.bf16.gmra.mxu1 %vm1735_vm11, %v4036_v8  ;;  %v4068_v49 = vld [vmem:[#allocation2 + $0x80] sm:$0xff]  }
 0x1a7   : > { %1544 = vst.msk [vmem:[#allocation2] sm:$0xf] %vm1543_vm10, %v3397_v5  ;;  %1545 = vst.msk [vmem:[#allocation2 + $0x4] sm:$0xf] %vm1543_vm10, %v3398_v6  ;;  %v1379_v22 = vsel %vm1325_vm8, %v1124_v63, %v1270_v9  ;;  %v4038_v13 = vld [vmem:[#allocation2 + $0x30] sm:$0xff]  }
 0x1a8   : > { %v1416_v10 = vsel %vm1380_vm9, %v1379_v22, %v1324_v14  ;;  %v4048_v32 = vld [vmem:[#allocation2 + $0x30] sm:$0xff]  }
 0x1a9   : > { %v4037_v12 = vld [vmem:[#allocation2 + $0x28] sm:$0xff]   ;;  %v3431_v50 = vcombine.low %v1416_v10, %v1416_v10  ;;  %v3432_v16 = vcombine.high %v1416_v10, %v1416_v10  ;;  %v4050_v61 = vld [vmem:[#allocation2 + $0x30] sm:$0xff]  }
 0x1aa   : > { %3840 = vmatprep.mubr.msk.bf16.mxu0 %vm1735_vm11, %v4037_v12  ;;  %v4047_v30 = vld [vmem:[#allocation2 + $0x28] sm:$0xff]  }
 0x1ab   : > { %1578 = vst.msk [vmem:[#allocation2 + $0x88] sm:$0xf] %vm1543_vm10, %v3431_v50  ;;  %1579 = vst.msk [vmem:[#allocation2 + $0x8c] sm:$0xf] %vm1543_vm10, %v3432_v16  ;;  %3841 = vmatmul.mubr.msk.bf16.gmra.mxu0 %vm1735_vm11, %v4038_v13  ;;  %v4049_v34 = vld [vmem:[#allocation2 + $0x28] sm:$0xff]  }
 0x1ac   : > { %3900 = vmatprep.mubr.msk.bf16.mxu0 %vm1735_vm11, %v4039_v18 }
 0x1ae   : > { %v4040_v33 = vld [vmem:[#allocation2] sm:$0xff]  }
 0x1af   : > { %3866 = vmatprep.mubr.msk.bf16.mxu1 %vm1735_vm11, %v4040_v33 }
 0x1b0   : > { %3867 = vmatmul.mubr.msk.bf16.vlgmr.msra.gmra.mxu1 %vm1735_vm11, %v4041_v23 }
 0x1b1   : > { %3870 = vmatprep.mubr.msk.bf16.mxu1 %vm1735_vm11, %v4042_v24  ;;  %3933 = vmatpush3.bf16.msra.mxu1 %v2756_v39  ;;  %v4652_v39 = vld [vmem:[%s4861_s6] ss:$0 sm:$0xff] }
 0x1b2   : > { %v4070_v52 = vld [vmem:[#allocation2 + $0x88] sm:$0xff]  }
 0x1b3   : > { %3901 = vmatmul.mubr.msk.bf16.vlgmr.msra.gmra.mxu0 %vm1735_vm11, %v4043_v27 }
 0x1b4   : > { %3904 = vmatprep.mubr.msk.bf16.mxu0 %vm1735_vm11, %v4044_v28 }
 0x1b8   : > { %3871 = vmatmul.mubr.msk.bf16.gmra.mxu1 %vm1735_vm11, %v4045_v29 }
 0x1b9   : > { %3874 = vmatprep.mubr.msk.bf16.mxu1 %vm1735_vm11, %v4046_v59 }
 0x1bb   : > { %3905 = vmatmul.mubr.msk.bf16.gmra.mxu0 %vm1735_vm11, %v4047_v30 }
 0x1bc   : > { %3908 = vmatprep.mubr.msk.bf16.mxu0 %vm1735_vm11, %v4048_v32 }
 0x1c0   : > { %3875 = vmatmul.mubr.msk.bf16.gmra.mxu1 %vm1735_vm11, %v4049_v34 }
 0x1c1   : > { %3878 = vmatprep.mubr.msk.bf16.mxu1 %vm1735_vm11, %v4050_v61 }
 0x1c3   : > { %3909 = vmatmul.mubr.msk.bf16.gmra.mxu0 %vm1735_vm11, %v4051_v36 }
 0x1c4   : > { %3912 = vmatprep.mubr.msk.bf16.mxu0 %vm1735_vm11, %v4052_v37 }
 0x1c8   : > { %3879 = vmatmul.mubr.msk.bf16.gmra.mxu1 %vm1735_vm11, %v4053_v41 }
 0x1c9   : > { %3882 = vmatprep.mubr.msk.bf16.mxu1 %vm1735_vm11, %v4054_v45 }
 0x1cb   : > { %3913 = vmatmul.mubr.msk.bf16.gmra.mxu0 %vm1735_vm11, %v4055_v58 }
 0x1cc   : > { %3916 = vmatprep.mubr.msk.bf16.mxu0 %vm1735_vm11, %v4056_v46 }
 0x1d0   : > { %3883 = vmatmul.mubr.msk.bf16.gmra.mxu1 %vm1735_vm11, %v4057_v17 }
 0x1d1   : > { %3886 = vmatprep.mubr.msk.bf16.mxu1 %vm1735_vm11, %v4058_v20 }
 0x1d3   : > { %3917 = vmatmul.mubr.msk.bf16.gmra.mxu0 %vm1735_vm11, %v4059_v48 }
 0x1d4   : > { %3920 = vmatprep.mubr.msk.bf16.mxu0 %vm1735_vm11, %v4060_v26 }
 0x1d8   : > { %3887 = vmatmul.mubr.msk.bf16.gmra.mxu1 %vm1735_vm11, %v4061_v31 }
 0x1d9   : > { %3890 = vmatprep.mubr.msk.bf16.mxu1 %vm1735_vm11, %v4062_v42 }
 0x1db   : > { %3921 = vmatmul.mubr.msk.bf16.gmra.mxu0 %vm1735_vm11, %v4063_v53 }
 0x1dc   : > { %3924 = vmatprep.mubr.msk.bf16.mxu0 %vm1735_vm11, %v4064_v15 }
 0x1e0   : > { %3891 = vmatmul.mubr.msk.bf16.gmra.mxu1 %vm1735_vm11, %v4065_v44 }
 0x1e1   : > { %3894 = vmatprep.mubr.msk.bf16.mxu1 %vm1735_vm11, %v4066_v11 }
 0x1e3   : > { %3925 = vmatmul.mubr.msk.bf16.gmra.mxu0 %vm1735_vm11, %v4067_v43 }
 0x1e4   : > { %3928 = vmatprep.mubr.msk.bf16.mxu0 %vm1735_vm11, %v4068_v49 }
 0x1e8   : > { %3895 = vmatmul.mubr.msk.bf16.gmra.mxu1 %vm1735_vm11, %v4069_v51 }
 0x1eb   : > { %3929 = vmatmul.mubr.msk.bf16.gmra.mxu0 %vm1735_vm11, %v4070_v52 }
 0x22b   : > { %v3834_v7 = vpop.f32.mrf.mxu0 }
 0x22d   : > { %v1822_v25 = vpop.f32.mrf.mxu0 }
 0x22f   : > { %v3835_v35 = vpop.f32.mrf.mxu0 }
 0x231   : > { %v1825_v0 = vpop.f32.mrf.mxu0 }
 0x244   : > { %v4607_v54 = vpop.f32.mrf.mxu1 }
 0x246   : > { %v4609_v55 = vpop.f32.mrf.mxu1 }
 0x248   : > { %v4611_v38 = vpop.f32.mrf.mxu1 }
 0x24a   : > { %v4613_v56 = vpop.f32.mrf.mxu1 }
 0x24c   : > { %v4615_v57 = vpop.f32.mrf.mxu1 }
 0x24e   : > { %v4617_v60 = vpop.f32.mrf.mxu1 }
 0x250   : > { %v4619_v4 = vpop.f32.mrf.mxu1  ;;  %v3838_v2 = vpop.f32.mrf.mxu0 }
 0x252   : > { %v4621_v62 = vpop.f32.mrf.mxu1  ;;  %v1838_v5 = vpop.f32.mrf.mxu0 }
 0x254   : > { %v3839_v14 = vpop.f32.mrf.mxu0 }
 0x256   : > { %v4623_v47 = vpop.f32.mrf.mxu1  ;;  %v1841_v10 = vpop.f32.mrf.mxu0 }
 0x258   : > { %v4625_v19 = vpop.f32.mrf.mxu1 }
 0x25a   : > { %v4627_v63 = vpop.f32.mrf.mxu1 }
 0x25c   : > { %v4629_v1 = vpop.f32.mrf.mxu1 }
 0x25e   : > { %v4631_v3 = vpop.f32.mrf.mxu1 }
 0x260   : > { %v4633_v40 = vpop.f32.mrf.mxu1 }
 0x262   : > { %v4635_v6 = vpop.f32.mrf.mxu1 }
 0x264   : > { %v4637_v8 = vpop.f32.mrf.mxu1 }
 0x266   : > { %v4639_v9 = vpop.f32.mrf.mxu1 }
 0x268   : > { %v4641_v22 = vpop.f32.mrf.mxu1 }
 0x26a   : > { %v4643_v12 = vpop.f32.mrf.mxu1 }
 0x26b   : > { %v3842_v50 = vpop.f32.mrf.mxu0 }
 0x26c   : > { %v4645_v13 = vpop.f32.mrf.mxu1 }
 0x26d   : > { %v1854_v16 = vpop.f32.mrf.mxu0 }
 0x26f   : > { %v3843_v18 = vpop.f32.mrf.mxu0 }
 0x270   : > { %v3868_v33 = vpop.f32.mrf.mxu1 }
 0x271   : > { %v4647_v23 = vpop.f32.mrf.mxu0  ;;  %v2128_v27 = vadd.f32 %v3868_v33, %v3834_v7 }
 0x272   : > { %v2119_v24 = vpop.f32.mrf.mxu1 }
 0x273   : > { %v2120_v28 = vadd.f32 %v2119_v24, %v1822_v25  ;;  %v3902_v21 = vpop.f32.mrf.mxu0 }
 0x274   : > { %v3869_v29 = vpop.f32.mrf.mxu1  ;;  %v2581_v61 = vadd.f32 %v3902_v21, %v2128_v27 }
 0x275   : > { %v2131_v59 = vadd.f32 %v3869_v29, %v3835_v35  ;;  %v2452_v30 = vpop.f32.mrf.mxu0 }
 0x276   : > { %v2579_v32 = vadd.f32 %v2452_v30, %v2120_v28  ;;  %v2122_v34 = vpop.f32.mrf.mxu1  ;;  %v2620_v26 = vadd.f32 %v4652_v39, %v2581_v61 }
 0x277   : > { %v2123_v36 = vadd.f32 %v2122_v34, %v1825_v0  ;;  %v3903_v37 = vpop.f32.mrf.mxu0 }
 0x278   : > { %v2582_v41 = vadd.f32 %v3903_v37, %v2131_v59  ;;  %v3872_v45 = vpop.f32.mrf.mxu1  ;;  %v2618_v46 = vadd.f32 %v4652_v39, %v2579_v32  ;;  %v2652_v35 = vmax.f32 %v2620_v26, 0.0 }
 0x279   : > { %v2455_v58 = vpop.f32.mrf.mxu0  ;;  %v2144_v31 = vadd.f32 %v3872_v45, %v3838_v2 }
 0x27a   : > { %v2621_v17 = vadd.f32 %v4652_v39, %v2582_v41  ;;  %v2580_v20 = vadd.f32 %v2455_v58, %v2123_v36  ;;  %v2135_v48 = vpop.f32.mrf.mxu1  ;;  %v2650_v51 = vmax.f32 %v2618_v46, 0.0 }
 0x27b   : > { %v2136_v42 = vadd.f32 %v2135_v48, %v1838_v5  ;;  %v3906_v53 = vpop.f32.mrf.mxu0 }
 0x27c   : > { %v2619_v15 = vadd.f32 %v4652_v39, %v2580_v20  ;;  %v3873_v44 = vpop.f32.mrf.mxu1  ;;  %v2653_v11 = vmax.f32 %v2621_v17, 0.0  ;;  %v2585_v0 = vadd.f32 %v3906_v53, %v2144_v31 }
 0x27d   : > { %v2147_v43 = vadd.f32 %v3873_v44, %v3839_v14  ;;  %v2468_v49 = vpop.f32.mrf.mxu0 }
 0x27e   : > { %v2651_v52 = vmax.f32 %v2619_v15, 0.0  ;;  %v2583_v7 = vadd.f32 %v2468_v49, %v2136_v42  ;;  %v2138_v25 = vpop.f32.mrf.mxu1  ;;  %v2683_v2 = vpack.c.bf16 %v2653_v11, %v2652_v35  ;;  %v2624_v32 = vadd.f32 %v4652_v39, %v2585_v0 }
 0x27f   : > { %v2139_v33 = vadd.f32 %v2138_v25, %v1841_v10  ;;  %v3907_v24 = vpop.f32.mrf.mxu0 }
 0x280   : > { %v2682_v27 = vpack.c.bf16 %v2651_v52, %v2650_v51  ;;  %v2586_v28 = vadd.f32 %v3907_v24, %v2147_v43  ;;  %v3876_v21 = vpop.f32.mrf.mxu1  ;;  %v2622_v29 = vadd.f32 %v4652_v39, %v2583_v7  ;;  %v2656_v26 = vmax.f32 %v2624_v32, 0.0 }
 0x281   : > { %v2471_v5 = vpop.f32.mrf.mxu0  ;;  %v2160_v34 = vadd.f32 %v3876_v21, %v3842_v50 }
 0x282   : > { %v2625_v59 = vadd.f32 %v4652_v39, %v2586_v28  ;;  %v2584_v30 = vadd.f32 %v2471_v5, %v2139_v33  ;;  %v2151_v14 = vpop.f32.mrf.mxu1  ;;  %3934 = vmatprep.mubr.msk.bf16.mxu1 %vm1325_vm8, %v2682_v27  ;;  %v2654_v46 = vmax.f32 %v2622_v29, 0.0 }
 0x283   : > { %v2152_v61 = vadd.f32 %v2151_v14, %v1854_v16  ;;  %v3910_v36 = vpop.f32.mrf.mxu0  ;;  %3935 = vmatmul.mubr.msk.bf16.vlgmr.msra.gmra.mxu1 %vm1325_vm8, %v2683_v2 }
 0x284   : > { %v2623_v10 = vadd.f32 %v4652_v39, %v2584_v30  ;;  %v3877_v37 = vpop.f32.mrf.mxu1  ;;  %v2657_v41 = vmax.f32 %v2625_v59, 0.0  ;;  %v2589_v31 = vadd.f32 %v3910_v36, %v2160_v34 }
 0x285   : > { %v2163_v45 = vadd.f32 %v3877_v37, %v3843_v18  ;;  %v2484_v58 = vpop.f32.mrf.mxu0 }
 0x286   : > { %v2655_v17 = vmax.f32 %v2623_v10, 0.0  ;;  %v2587_v20 = vadd.f32 %v2484_v58, %v2152_v61  ;;  %v2154_v48 = vpop.f32.mrf.mxu1  ;;  %v2685_v44 = vpack.c.bf16 %v2657_v41, %v2656_v26  ;;  %v2628_v52 = vadd.f32 %v4652_v39, %v2589_v31 }
 0x287   : > { %v2155_v42 = vadd.f32 %v2154_v48, %v4647_v23  ;;  %v3911_v53 = vpop.f32.mrf.mxu0 }
 0x288   : > { %v2684_v50 = vpack.c.bf16 %v2655_v17, %v2654_v46  ;;  %v2590_v16 = vadd.f32 %v3911_v53, %v2163_v45  ;;  %v3880_v15 = vpop.f32.mrf.mxu1  ;;  %v2626_v43 = vadd.f32 %v4652_v39, %v2587_v20  ;;  %v2660_v29 = vmax.f32 %v2628_v52, 0.0 }
 0x289   : > { %v2487_v11 = vpop.f32.mrf.mxu0  ;;  %v2176_v7 = vadd.f32 %v3880_v15, %v4607_v54 }
 0x28a   : > { %v2629_v49 = vadd.f32 %v4652_v39, %v2590_v16  ;;  %v2588_v18 = vadd.f32 %v2487_v11, %v2155_v42  ;;  %v2167_v51 = vpop.f32.mrf.mxu1  ;;  %3938 = vmatprep.mubr.msk.bf16.mxu1 %vm1325_vm8, %v2684_v50  ;;  %v2658_v28 = vmax.f32 %v2626_v43, 0.0 }
 0x28b   : > { %v2168_v23 = vadd.f32 %v2167_v51, %v4609_v55  ;;  %v3914_v25 = vpop.f32.mrf.mxu0  ;;  %3939 = vmatmul.mubr.msk.bf16.gmra.mxu1 %vm1325_vm8, %v2685_v44 }
 0x28c   : > { %v2627_v35 = vadd.f32 %v4652_v39, %v2588_v18  ;;  %v3881_v0 = vpop.f32.mrf.mxu1  ;;  %v2661_v33 = vmax.f32 %v2629_v49, 0.0  ;;  %v2593_v59 = vadd.f32 %v3914_v25, %v2176_v7 }
 0x28d   : > { %v2179_v24 = vadd.f32 %v3881_v0, %v4611_v38  ;;  %v2500_v27 = vpop.f32.mrf.mxu0 }
 0x28e   : > { %v2659_v21 = vmax.f32 %v2627_v35, 0.0  ;;  %v2591_v2 = vadd.f32 %v2500_v27, %v2168_v23  ;;  %v2170_v5 = vpop.f32.mrf.mxu1  ;;  %v2687_v34 = vpack.c.bf16 %v2661_v33, %v2660_v29  ;;  %v2632_v41 = vadd.f32 %v4652_v39, %v2593_v59 }
 0x28f   : > { %v2171_v54 = vadd.f32 %v2170_v5, %v4613_v56  ;;  %v3915_v30 = vpop.f32.mrf.mxu0 }
 0x290   : > { %v2686_v55 = vpack.c.bf16 %v2659_v21, %v2658_v28  ;;  %v2594_v14 = vadd.f32 %v3915_v30, %v2179_v24  ;;  %v3884_v32 = vpop.f32.mrf.mxu1  ;;  %v2630_v36 = vadd.f32 %v4652_v39, %v2591_v2  ;;  %v2664_v16 = vmax.f32 %v2632_v41, 0.0 }
 0x291   : > { %v2503_v61 = vpop.f32.mrf.mxu0  ;;  %v2192_v45 = vadd.f32 %v3884_v32, %v4615_v57 }
 0x292   : > { %v2633_v10 = vadd.f32 %v4652_v39, %v2594_v14  ;;  %v2592_v38 = vadd.f32 %v2503_v61, %v2171_v54  ;;  %v2183_v37 = vpop.f32.mrf.mxu1  ;;  %3942 = vmatprep.mubr.msk.bf16.mxu1 %vm1325_vm8, %v2686_v55  ;;  %v2662_v31 = vmax.f32 %v2630_v36, 0.0 }
 0x293   : > { %v2184_v56 = vadd.f32 %v2183_v37, %v4617_v60  ;;  %v3918_v58 = vpop.f32.mrf.mxu0  ;;  %3943 = vmatmul.mubr.msk.bf16.gmra.mxu1 %vm1325_vm8, %v2687_v34 }
 0x294   : > { %v2631_v46 = vadd.f32 %v4652_v39, %v2592_v38  ;;  %v3885_v17 = vpop.f32.mrf.mxu1  ;;  %v2665_v20 = vmax.f32 %v2633_v10, 0.0  ;;  %v2597_v15 = vadd.f32 %v3918_v58, %v2192_v45 }
 0x295   : > { %v2195_v48 = vadd.f32 %v3885_v17, %v4619_v4  ;;  %v2516_v26 = vpop.f32.mrf.mxu0 }
 0x296   : > { %v2663_v42 = vmax.f32 %v2631_v46, 0.0  ;;  %v2595_v53 = vadd.f32 %v2516_v26, %v2184_v56  ;;  %v2186_v50 = vpop.f32.mrf.mxu1  ;;  %v2689_v49 = vpack.c.bf16 %v2665_v20, %v2664_v16  ;;  %v2636_v23 = vadd.f32 %v4652_v39, %v2597_v15 }
 0x297   : > { %v2187_v57 = vadd.f32 %v2186_v50, %v4621_v62  ;;  %v3919_v44 = vpop.f32.mrf.mxu0 }
 0x298   : > { %v2688_v60 = vpack.c.bf16 %v2663_v42, %v2662_v31  ;;  %v2598_v11 = vadd.f32 %v3919_v44, %v2195_v48  ;;  %v3888_v43 = vpop.f32.mrf.mxu1  ;;  %v2634_v51 = vadd.f32 %v4652_v39, %v2595_v53  ;;  %v2668_v59 = vmax.f32 %v2636_v23, 0.0 }
 0x299   : > { %v2519_v18 = vpop.f32.mrf.mxu0  ;;  %v2208_v25 = vadd.f32 %v3888_v43, %v4623_v47 }
 0x29a   : > { %v2637_v52 = vadd.f32 %v4652_v39, %v2598_v11  ;;  %v2596_v4 = vadd.f32 %v2519_v18, %v2187_v57  ;;  %v2199_v7 = vpop.f32.mrf.mxu1  ;;  %3946 = vmatprep.mubr.msk.bf16.mxu1 %vm1325_vm8, %v2688_v60  ;;  %v2666_v21 = vmax.f32 %v2634_v51, 0.0 }
 0x29b   : > { %v2200_v62 = vadd.f32 %v2199_v7, %v4625_v19  ;;  %v3922_v35 = vpop.f32.mrf.mxu0  ;;  %3947 = vmatmul.mubr.msk.bf16.gmra.mxu1 %vm1325_vm8, %v2689_v49 }
 0x29c   : > { %v2635_v0 = vadd.f32 %v4652_v39, %v2596_v4  ;;  %v3889_v33 = vpop.f32.mrf.mxu1  ;;  %v2669_v24 = vmax.f32 %v2637_v52, 0.0  ;;  %v2601_v54 = vadd.f32 %v3922_v35, %v2208_v25 }
 0x29d   : > { %v2211_v27 = vadd.f32 %v3889_v33, %v4627_v63  ;;  %v2532_v28 = vpop.f32.mrf.mxu0 }
 0x29e   : > { %v2667_v2 = vmax.f32 %v2635_v0, 0.0  ;;  %v2599_v5 = vadd.f32 %v2532_v28, %v2200_v62  ;;  %v2202_v29 = vpop.f32.mrf.mxu1  ;;  %v2691_v32 = vpack.c.bf16 %v2669_v24, %v2668_v59  ;;  %v2640_v38 = vadd.f32 %v4652_v39, %v2601_v54 }
 0x29f   : > { %v2203_v47 = vadd.f32 %v2202_v29, %v4629_v1  ;;  %v3923_v30 = vpop.f32.mrf.mxu0 }
 0x2a0   : > { %v2690_v19 = vpack.c.bf16 %v2667_v2, %v2666_v21  ;;  %v2602_v55 = vadd.f32 %v3923_v30, %v2211_v27  ;;  %v3892_v14 = vpop.f32.mrf.mxu1  ;;  %v2638_v61 = vadd.f32 %v4652_v39, %v2599_v5  ;;  %v2672_v42 = vmax.f32 %v2640_v38, 0.0 }
 0x2a1   : > { %v2535_v34 = vpop.f32.mrf.mxu0  ;;  %v2224_v37 = vadd.f32 %v3892_v14, %v4631_v3 }
 0x2a2   : > { %v2641_v36 = vadd.f32 %v4652_v39, %v2602_v55  ;;  %v2600_v63 = vadd.f32 %v2535_v34, %v2203_v47  ;;  %v2215_v10 = vpop.f32.mrf.mxu1  ;;  %3950 = vmatprep.mubr.msk.bf16.mxu1 %vm1325_vm8, %v2690_v19  ;;  %v2670_v20 = vmax.f32 %v2638_v61, 0.0  ;;  %v3690_v34 = vld [vmem:[%s4176_s18 + $0x8] sm:$0xff]   ;;  %v4727_v61 = vld [vmem:[%s4863_s8] ss:$0 sm:$0xff] }
 0x2a3   : > { %v2216_v1 = vadd.f32 %v2215_v10, %v4633_v40  ;;  %v3926_v41 = vpop.f32.mrf.mxu0  ;;  %3951 = vmatmul.mubr.msk.bf16.gmra.mxu1 %vm1325_vm8, %v2691_v32 }
 0x2a4   : > { %v2639_v45 = vadd.f32 %v4652_v39, %v2600_v63  ;;  %v3893_v56 = vpop.f32.mrf.mxu1  ;;  %v2673_v58 = vmax.f32 %v2641_v36, 0.0  ;;  %v2605_v53 = vadd.f32 %v3926_v41, %v2224_v37  ;;  %v3626_v36 = vld [vmem:[%s4176_s18] sm:$0xff]  }
 0x2a5   : > { %v2227_v46 = vadd.f32 %v3893_v56, %v4635_v6  ;;  %v2548_v17 = vpop.f32.mrf.mxu0  ;;  %v3627_v38 = vunpack.c.l.bf16 %v3626_v36  ;;  %v3692_v56 = vld [vmem:[%s4176_s18 + $0x18] sm:$0xff]  }
 0x2a6   : > { %v2671_v48 = vmax.f32 %v2639_v45, 0.0  ;;  %v2603_v26 = vadd.f32 %v2548_v17, %v2216_v1  ;;  %v2218_v31 = vpop.f32.mrf.mxu1  ;;  %v2693_v57 = vpack.c.bf16 %v2673_v58, %v2672_v42  ;;  %v2644_v49 = vadd.f32 %v4652_v39, %v2605_v53 }
 0x2a7   : > { %v2219_v3 = vadd.f32 %v2218_v31, %v4637_v8  ;;  %v3927_v50 = vpop.f32.mrf.mxu0  ;;  %v3632_v45 = vunpack.c.h.bf16 %v3690_v34  ;;  %v3639_v42 = vunpack.c.l.bf16 %v3692_v56 }
 0x2a8   : > { %v2692_v40 = vpack.c.bf16 %v2671_v48, %v2670_v20  ;;  %v2606_v16 = vadd.f32 %v3927_v50, %v2227_v46  ;;  %v3896_v15 = vpop.f32.mrf.mxu1  ;;  %v2642_v60 = vadd.f32 %v4652_v39, %v2603_v26  ;;  %v2676_v24 = vmax.f32 %v2644_v49, 0.0  ;;  %v3691_v26 = vld [vmem:[%s4176_s18 + $0x10] sm:$0xff]  }
 0x2a9   : > { %v2551_v44 = vpop.f32.mrf.mxu0  ;;  %v2240_v18 = vadd.f32 %v3896_v15, %v4639_v9  ;;  %v3628_v48 = vunpack.c.h.bf16 %v3626_v36  ;;  %v3635_v15 = vunpack.c.l.bf16 %v3691_v26 }
 0x2aa   : > { %v2645_v11 = vadd.f32 %v4652_v39, %v2606_v16  ;;  %v2604_v6 = vadd.f32 %v2551_v44, %v2219_v3  ;;  %v2231_v43 = vpop.f32.mrf.mxu1  ;;  %3954 = vmatprep.mubr.msk.bf16.mxu1 %vm1325_vm8, %v2692_v40  ;;  %v2674_v62 = vmax.f32 %v2642_v60, 0.0 }
 0x2ab   : > { %v2232_v8 = vadd.f32 %v2231_v43, %v4641_v22  ;;  %v3930_v51 = vpop.f32.mrf.mxu0  ;;  %3955 = vmatmul.mubr.msk.bf16.gmra.mxu1 %vm1325_vm8, %v2693_v57  ;;  %v3640_v43 = vunpack.c.h.bf16 %v3692_v56 }
 0x2ac   : > { %v2643_v52 = vadd.f32 %v4652_v39, %v2604_v6  ;;  %v3897_v4 = vpop.f32.mrf.mxu1  ;;  %v2677_v7 = vmax.f32 %v2645_v11, 0.0  ;;  %v2609_v27 = vadd.f32 %v3930_v51, %v2240_v18 }
 0x2ad   : > { %v2243_v23 = vadd.f32 %v3897_v4, %v4643_v12  ;;  %v2564_v25 = vpop.f32.mrf.mxu0 }
 0x2ae   : > { %v2675_v35 = vmax.f32 %v2643_v52, 0.0  ;;  %v2607_v0 = vadd.f32 %v2564_v25, %v2232_v8  ;;  %v2234_v33 = vpop.f32.mrf.mxu1  ;;  %v2695_v2 = vpack.c.bf16 %v2677_v7, %v2676_v24  ;;  %v2648_v54 = vadd.f32 %v4652_v39, %v2609_v27  ;;  %v3694_v52 = vld [vmem:[%s4176_s18 + $0x28] sm:$0xff]  }
 0x2af   : > { %v2235_v9 = vadd.f32 %v2234_v33, %v4645_v13  ;;  %v3931_v28 = vpop.f32.mrf.mxu0  ;;  %v3636_v7 = vunpack.c.h.bf16 %v3691_v26  ;;  %v3647_v24 = vunpack.c.l.bf16 %v3694_v52 }
 0x2b0   : > { %v2694_v22 = vpack.c.bf16 %v2675_v35, %v2674_v62  ;;  %v2610_v21 = vadd.f32 %v3931_v28, %v2243_v23  ;;  %v2646_v29 = vadd.f32 %v4652_v39, %v2607_v0  ;;  %v2680_v55 = vmax.f32 %v2648_v54, 0.0  ;;  %v3693_v0 = vld [vmem:[%s4176_s18 + $0x20] sm:$0xff]  }
 0x2b1   : > { %v2567_v5 = vpop.f32.mrf.mxu0 }
 0x2b2   : > { %v2649_v59 = vadd.f32 %v4652_v39, %v2610_v21  ;;  %v2608_v12 = vadd.f32 %v2567_v5, %v2235_v9  ;;  %3958 = vmatprep.mubr.msk.bf16.mxu1 %vm1325_vm8, %v2694_v22  ;;  %v2678_v30 = vmax.f32 %v2646_v29, 0.0 }
 0x2b3   : > { %3959 = vmatmul.mubr.msk.bf16.gmra.mxu1 %vm1325_vm8, %v2695_v2  ;;  %v3643_v2 = vunpack.c.l.bf16 %v3693_v0 }
 0x2b4   : > { %v2647_v13 = vadd.f32 %v4652_v39, %v2608_v12  ;;  %v2681_v47 = vmax.f32 %v2649_v59, 0.0  ;;  %v3631_v39 = vunpack.c.l.bf16 %v3690_v34  ;;  %v3644_v34 = vunpack.c.h.bf16 %v3693_v0 }
 0x2b6   : > { %v2679_v19 = vmax.f32 %v2647_v13, 0.0  ;;  %v2697_v32 = vpack.c.bf16 %v2681_v47, %v2680_v55  ;;  %v3648_v13 = vunpack.c.h.bf16 %v3694_v52 }
 0x2b8   : > { %v2696_v14 = vpack.c.bf16 %v2679_v19, %v2678_v30 }
 0x2ba   : > { %3962 = vmatprep.mubr.msk.bf16.mxu1 %vm1325_vm8, %v2696_v14  ;;  %v3696_v14 = vld [vmem:[%s4176_s18 + $0x38] sm:$0xff]  }
 0x2bb   : > { %3963 = vmatmul.mubr.msk.bf16.gmra.mxu1 %vm1325_vm8, %v2697_v32 }
 0x343   : > { %v3936_v63 = vpop.f32.mrf.mxu1 }
 0x344   : > { %v2801_v10 = vadd.f32 %v3936_v63, %v4727_v61 }
 0x345   : > { %v2792_v37 = vpop.f32.mrf.mxu1 }
 0x346   : > { %v2985_v1 = vadd.f32 %v3631_v39, %v2801_v10  ;;  %v2793_v41 = vadd.f32 %v4727_v61, %v2792_v37 }
 0x347   : > { %v3937_v58 = vpop.f32.mrf.mxu1 }
 0x348   : > { %v3017_v46 = vmax.f32 %v2985_v1, 0.0  ;;  %v2983_v17 = vadd.f32 %v3627_v38, %v2793_v41  ;;  %v2804_v20 = vadd.f32 %v3937_v58, %v4727_v61  ;;  %v3695_v38 = vld [vmem:[%s4176_s18 + $0x30] sm:$0xff]   ;;  %v3655_v1 = vunpack.c.l.bf16 %v3696_v14 }
 0x349   : > { %v2795_v31 = vpop.f32.mrf.mxu1 }
 0x34a   : > { %v3595_v53 = vpack.c.bf16 %v3017_v46, %v3017_v46  ;;  %v3015_v3 = vmax.f32 %v2983_v17, 0.0  ;;  %v2986_v50 = vadd.f32 %v3632_v45, %v2804_v20  ;;  %v2796_v40 = vadd.f32 %v4727_v61, %v2795_v31 }
 0x34b   : > { %v3940_v16 = vpop.f32.mrf.mxu1  ;;  %v3651_v17 = vunpack.c.l.bf16 %v3695_v38 }
 0x34c   : > { %3178 = vst.msk [vmem:[%s4739_s28 + $0x8] sm:$0xf] %vm3175_vm13, %v3595_v53  ;;  %v3593_v57 = vpack.c.bf16 %v3015_v3, %v3015_v3  ;;  %v3018_v44 = vmax.f32 %v2986_v50, 0.0  ;;  %v2984_v60 = vadd.f32 %v3628_v48, %v2796_v40  ;;  %v2817_v11 = vadd.f32 %v3940_v16, %v4727_v61 }
 0x34d   : > { %v2808_v6 = vpop.f32.mrf.mxu1  ;;  %v3656_v53 = vunpack.c.h.bf16 %v3696_v14 }
 0x34e   : > { %3176 = vst.msk [vmem:[%s4739_s28] sm:$0xf] %vm3175_vm13, %v3593_v57  ;;  %v3596_v49 = vpack.c.bf16 %v3018_v44, %v3018_v44  ;;  %v3016_v18 = vmax.f32 %v2984_v60, 0.0  ;;  %v2989_v8 = vadd.f32 %v3639_v42, %v2817_v11  ;;  %v2809_v51 = vadd.f32 %v4727_v61, %v2808_v6 }
 0x34f   : > { %v3941_v4 = vpop.f32.mrf.mxu1  ;;  %v3652_v44 = vunpack.c.h.bf16 %v3695_v38 }
 0x350   : > { %3179 = vst.msk [vmem:[%s4739_s28 + $0xc] sm:$0xf] %vm3175_vm13, %v3596_v49  ;;  %v3594_v23 = vpack.c.bf16 %v3016_v18, %v3016_v18  ;;  %v3021_v25 = vmax.f32 %v2989_v8, 0.0  ;;  %v2987_v62 = vadd.f32 %v3635_v15, %v2809_v51  ;;  %v2820_v35 = vadd.f32 %v3941_v4, %v4727_v61  ;;  %v3698_v15 = vld [vmem:[%s4176_s18 + $0x48] sm:$0xff]   ;;  %v3697_v49 = vld [vmem:[%s4176_s18 + $0x40] sm:$0xff]  }
 0x351   : > { %v2811_v33 = vpop.f32.mrf.mxu1  ;;  %v3663_v8 = vunpack.c.l.bf16 %v3698_v15 }
 0x352   : > { %3177 = vst.msk [vmem:[%s4739_s28 + $0x4] sm:$0xf] %vm3175_vm13, %v3594_v23  ;;  %v3599_v27 = vpack.c.bf16 %v3021_v25, %v3021_v25  ;;  %v3019_v9 = vmax.f32 %v2987_v62, 0.0  ;;  %v2990_v28 = vadd.f32 %v3640_v43, %v2820_v35  ;;  %v2812_v22 = vadd.f32 %v4727_v61, %v2811_v33 }
 0x353   : > { %v3944_v21 = vpop.f32.mrf.mxu1  ;;  %v3659_v25 = vunpack.c.l.bf16 %v3697_v49 }
 0x354   : > { %3182 = vst.msk [vmem:[%s4739_s28 + $0x18] sm:$0xf] %vm3175_vm13, %v3599_v27  ;;  %v3597_v5 = vpack.c.bf16 %v3019_v9, %v3019_v9  ;;  %v3022_v29 = vmax.f32 %v2990_v28, 0.0  ;;  %v2988_v59 = vadd.f32 %v3636_v7, %v2812_v22  ;;  %v2833_v12 = vadd.f32 %v3944_v21, %v4727_v61 }
 0x355   : > { %v2824_v54 = vpop.f32.mrf.mxu1  ;;  %v3664_v27 = vunpack.c.h.bf16 %v3698_v15 }
 0x356   : > { %3180 = vst.msk [vmem:[%s4739_s28 + $0x10] sm:$0xf] %vm3175_vm13, %v3597_v5  ;;  %v3600_v47 = vpack.c.bf16 %v3022_v29, %v3022_v29  ;;  %v3020_v30 = vmax.f32 %v2988_v59, 0.0  ;;  %v2993_v19 = vadd.f32 %v3647_v24, %v2833_v12  ;;  %v2825_v55 = vadd.f32 %v4727_v61, %v2824_v54 }
 0x357   : > { %v3945_v32 = vpop.f32.mrf.mxu1  ;;  %v3660_v29 = vunpack.c.h.bf16 %v3697_v49 }
 0x358   : > { %3183 = vst.msk [vmem:[%s4739_s28 + $0x1c] sm:$0xf] %vm3175_vm13, %v3600_v47  ;;  %v3598_v36 = vpack.c.bf16 %v3020_v30, %v3020_v30  ;;  %v3025_v39 = vmax.f32 %v2993_v19, 0.0  ;;  %v2991_v63 = vadd.f32 %v3643_v2, %v2825_v55  ;;  %v2836_v10 = vadd.f32 %v3945_v32, %v4727_v61  ;;  %v3700_v2 = vld [vmem:[%s4176_s18 + $0x58] sm:$0xff]   ;;  %v3699_v47 = vld [vmem:[%s4176_s18 + $0x50] sm:$0xff]  }
 0x359   : > { %v2827_v37 = vpop.f32.mrf.mxu1  ;;  %v3671_v19 = vunpack.c.l.bf16 %v3700_v2 }
 0x35a   : > { %3181 = vst.msk [vmem:[%s4739_s28 + $0x14] sm:$0xf] %vm3175_vm13, %v3598_v36  ;;  %v3603_v41 = vpack.c.bf16 %v3025_v39, %v3025_v39  ;;  %v3023_v45 = vmax.f32 %v2991_v63, 0.0  ;;  %v2994_v56 = vadd.f32 %v3648_v13, %v2836_v10  ;;  %v2828_v58 = vadd.f32 %v4727_v61, %v2827_v37 }
 0x35b   : > { %v3948_v46 = vpop.f32.mrf.mxu1  ;;  %v3667_v39 = vunpack.c.l.bf16 %v3699_v47 }
 0x35c   : > { %3186 = vst.msk [vmem:[%s4739_s28 + $0x28] sm:$0xf] %vm3175_vm13, %v3603_v41  ;;  %v3601_v20 = vpack.c.bf16 %v3023_v45, %v3023_v45  ;;  %v3026_v48 = vmax.f32 %v2994_v56, 0.0  ;;  %v2992_v26 = vadd.f32 %v3644_v34, %v2828_v58  ;;  %v2849_v31 = vadd.f32 %v3948_v46, %v4727_v61 }
 0x35d   : > { %v2840_v42 = vpop.f32.mrf.mxu1  ;;  %v3672_v41 = vunpack.c.h.bf16 %v3700_v2 }
 0x35e   : > { %3184 = vst.msk [vmem:[%s4739_s28 + $0x20] sm:$0xf] %vm3175_vm13, %v3601_v20  ;;  %v3604_v3 = vpack.c.bf16 %v3026_v48, %v3026_v48  ;;  %v3024_v50 = vmax.f32 %v2992_v26, 0.0  ;;  %v2997_v40 = vadd.f32 %v3655_v1, %v2849_v31  ;;  %v2841_v16 = vadd.f32 %v4727_v61, %v2840_v42 }
 0x35f   : > { %v3949_v57 = vpop.f32.mrf.mxu1  ;;  %v3668_v48 = vunpack.c.h.bf16 %v3699_v47 }
 0x360   : > { %3187 = vst.msk [vmem:[%s4739_s28 + $0x2c] sm:$0xf] %vm3175_vm13, %v3604_v3  ;;  %v3602_v60 = vpack.c.bf16 %v3024_v50, %v3024_v50  ;;  %v3029_v11 = vmax.f32 %v2997_v40, 0.0  ;;  %v2995_v6 = vadd.f32 %v3651_v17, %v2841_v16  ;;  %v2852_v43 = vadd.f32 %v3949_v57, %v4727_v61  ;;  %v3702_v17 = vld [vmem:[%s4176_s18 + $0x68] sm:$0xff]   ;;  %v3701_v3 = vld [vmem:[%s4176_s18 + $0x60] sm:$0xff]  }
 0x361   : > { %v2843_v18 = vpop.f32.mrf.mxu1  ;;  %v3679_v40 = vunpack.c.l.bf16 %v3702_v17 }
 0x362   : > { %3185 = vst.msk [vmem:[%s4739_s28 + $0x24] sm:$0xf] %vm3175_vm13, %v3602_v60  ;;  %v3607_v51 = vpack.c.bf16 %v3029_v11, %v3029_v11  ;;  %v3027_v52 = vmax.f32 %v2995_v6, 0.0  ;;  %v2998_v4 = vadd.f32 %v3656_v53, %v2852_v43  ;;  %v2844_v7 = vadd.f32 %v4727_v61, %v2843_v18 }
 0x363   : > { %v3952_v23 = vpop.f32.mrf.mxu1  ;;  %v3675_v11 = vunpack.c.l.bf16 %v3701_v3 }
 0x364   : > { %3190 = vst.msk [vmem:[%s4739_s28 + $0x38] sm:$0xf] %vm3175_vm13, %v3607_v51  ;;  %v3605_v62 = vpack.c.bf16 %v3027_v52, %v3027_v52  ;;  %v3030_v35 = vmax.f32 %v2998_v4, 0.0  ;;  %v2996_v0 = vadd.f32 %v3652_v44, %v2844_v7  ;;  %v2865_v33 = vadd.f32 %v3952_v23, %v4727_v61 }
 0x365   : > { %v2856_v24 = vpop.f32.mrf.mxu1  ;;  %v3680_v51 = vunpack.c.h.bf16 %v3702_v17 }
 0x366   : > { %3188 = vst.msk [vmem:[%s4739_s28 + $0x30] sm:$0xf] %vm3175_vm13, %v3605_v62  ;;  %v3608_v9 = vpack.c.bf16 %v3030_v35, %v3030_v35  ;;  %v3028_v28 = vmax.f32 %v2996_v0, 0.0  ;;  %v3001_v22 = vadd.f32 %v3663_v8, %v2865_v33  ;;  %v2857_v21 = vadd.f32 %v4727_v61, %v2856_v24 }
 0x367   : > { %v3953_v5 = vpop.f32.mrf.mxu1  ;;  %v3676_v35 = vunpack.c.h.bf16 %v3701_v3 }
 0x368   : > { %3191 = vst.msk [vmem:[%s4739_s28 + $0x3c] sm:$0xf] %vm3175_vm13, %v3608_v9  ;;  %v3606_v59 = vpack.c.bf16 %v3028_v28, %v3028_v28  ;;  %v3033_v12 = vmax.f32 %v3001_v22, 0.0  ;;  %v2999_v54 = vadd.f32 %v3659_v25, %v2857_v21  ;;  %v2868_v13 = vadd.f32 %v3953_v5, %v4727_v61  ;;  %v3704_v25 = vld [vmem:[%s4176_s18 + $0x78] sm:$0xff]   ;;  %v3703_v9 = vld [vmem:[%s4176_s18 + $0x70] sm:$0xff]  }
 0x369   : > { %v2859_v30 = vpop.f32.mrf.mxu1  ;;  %v3687_v22 = vunpack.c.l.bf16 %v3704_v25 }
 0x36a   : > { %3189 = vst.msk [vmem:[%s4739_s28 + $0x34] sm:$0xf] %vm3175_vm13, %v3606_v59  ;;  %v3611_v55 = vpack.c.bf16 %v3033_v12, %v3033_v12  ;;  %v3031_v14 = vmax.f32 %v2999_v54, 0.0  ;;  %v3002_v32 = vadd.f32 %v3664_v27, %v2868_v13  ;;  %v2860_v34 = vadd.f32 %v4727_v61, %v2859_v30 }
 0x36b   : > { %v3956_v36 = vpop.f32.mrf.mxu1  ;;  %v3683_v12 = vunpack.c.l.bf16 %v3703_v9 }
 0x36c   : > { %3194 = vst.msk [vmem:[%s4739_s28 + $0x48] sm:$0xf] %vm3175_vm13, %v3611_v55  ;;  %v3609_v63 = vpack.c.bf16 %v3031_v14, %v3031_v14  ;;  %v3034_v10 = vmax.f32 %v3002_v32, 0.0  ;;  %v3000_v38 = vadd.f32 %v3660_v29, %v2860_v34  ;;  %v2881_v37 = vadd.f32 %v3956_v36, %v4727_v61 }
 0x36d   : > { %v2872_v1 = vpop.f32.mrf.mxu1  ;;  %v3688_v55 = vunpack.c.h.bf16 %v3704_v25 }
 0x36e   : > { %3192 = vst.msk [vmem:[%s4739_s28 + $0x40] sm:$0xf] %vm3175_vm13, %v3609_v63  ;;  %v3612_v45 = vpack.c.bf16 %v3034_v10, %v3034_v10  ;;  %v3032_v56 = vmax.f32 %v3000_v38, 0.0  ;;  %v3005_v58 = vadd.f32 %v3671_v19, %v2881_v37  ;;  %v2873_v46 = vadd.f32 %v4727_v61, %v2872_v1 }
 0x36f   : > { %v3957_v20 = vpop.f32.mrf.mxu1  ;;  %v3684_v63 = vunpack.c.h.bf16 %v3703_v9 }
 0x370   : > { %3195 = vst.msk [vmem:[%s4739_s28 + $0x4c] sm:$0xf] %vm3175_vm13, %v3612_v45  ;;  %v3610_v26 = vpack.c.bf16 %v3032_v56, %v3032_v56  ;;  %v3037_v31 = vmax.f32 %v3005_v58, 0.0  ;;  %v3003_v42 = vadd.f32 %v3667_v39, %v2873_v46  ;;  %v2884_v53 = vadd.f32 %v3957_v20, %v4727_v61 }
 0x371   : > { %v2875_v50 = vpop.f32.mrf.mxu1 }
 0x372   : > { %3193 = vst.msk [vmem:[%s4739_s28 + $0x44] sm:$0xf] %vm3175_vm13, %v3610_v26  ;;  %v3615_v16 = vpack.c.bf16 %v3037_v31, %v3037_v31  ;;  %v3035_v15 = vmax.f32 %v3003_v42, 0.0  ;;  %v3006_v57 = vadd.f32 %v3672_v41, %v2884_v53  ;;  %v2876_v44 = vadd.f32 %v4727_v61, %v2875_v50 }
 0x373   : > { %v3960_v60 = vpop.f32.mrf.mxu1 }
 0x374   : > { %3198 = vst.msk [vmem:[%s4739_s28 + $0x58] sm:$0xf] %vm3175_vm13, %v3615_v16  ;;  %v3613_v6 = vpack.c.bf16 %v3035_v15, %v3035_v15  ;;  %v3038_v43 = vmax.f32 %v3006_v57, 0.0  ;;  %v3004_v49 = vadd.f32 %v3668_v48, %v2876_v44  ;;  %v2897_v18 = vadd.f32 %v3960_v60, %v4727_v61 }
 0x375   : > { %v2888_v8 = vpop.f32.mrf.mxu1 }
 0x376   : > { %3196 = vst.msk [vmem:[%s4739_s28 + $0x50] sm:$0xf] %vm3175_vm13, %v3613_v6  ;;  %v3616_v52 = vpack.c.bf16 %v3038_v43, %v3038_v43  ;;  %v3036_v4 = vmax.f32 %v3004_v49, 0.0  ;;  %v3009_v7 = vadd.f32 %v3679_v40, %v2897_v18  ;;  %v2889_v23 = vadd.f32 %v4727_v61, %v2888_v8 }
 0x377   : > { %v3961_v62 = vpop.f32.mrf.mxu1 }
 0x378   : > { %3199 = vst.msk [vmem:[%s4739_s28 + $0x5c] sm:$0xf] %vm3175_vm13, %v3616_v52  ;;  %v3614_v0 = vpack.c.bf16 %v3036_v4, %v3036_v4  ;;  %v3041_v33 = vmax.f32 %v3009_v7, 0.0  ;;  %v3007_v24 = vadd.f32 %v3675_v11, %v2889_v23  ;;  %v2900_v27 = vadd.f32 %v3961_v62, %v4727_v61 }
 0x379   : > { %v2891_v28 = vpop.f32.mrf.mxu1 }
 0x37a   : > { %3197 = vst.msk [vmem:[%s4739_s28 + $0x54] sm:$0xf] %vm3175_vm13, %v3614_v0  ;;  %v3619_v21 = vpack.c.bf16 %v3041_v33, %v3041_v33  ;;  %v3039_v2 = vmax.f32 %v3007_v24, 0.0  ;;  %v3010_v5 = vadd.f32 %v3680_v51, %v2900_v27  ;;  %v2892_v29 = vadd.f32 %v4727_v61, %v2891_v28 }
 0x37b   : > { %v3964_v59 = vpop.f32.mrf.mxu1 }
 0x37c   : > { %3202 = vst.msk [vmem:[%s4739_s28 + $0x68] sm:$0xf] %vm3175_vm13, %v3619_v21  ;;  %v3617_v54 = vpack.c.bf16 %v3039_v2, %v3039_v2  ;;  %v3042_v13 = vmax.f32 %v3010_v5, 0.0  ;;  %v3008_v47 = vadd.f32 %v3676_v35, %v2892_v29  ;;  %v2913_v30 = vadd.f32 %v3964_v59, %v4727_v61 }
 0x37d   : > { %v2904_v19 = vpop.f32.mrf.mxu1 }
 0x37e   : > { %3200 = vst.msk [vmem:[%s4739_s28 + $0x60] sm:$0xf] %vm3175_vm13, %v3617_v54  ;;  %v3620_v14 = vpack.c.bf16 %v3042_v13, %v3042_v13  ;;  %v3040_v32 = vmax.f32 %v3008_v47, 0.0  ;;  %v3013_v34 = vadd.f32 %v3687_v22, %v2913_v30  ;;  %v2905_v36 = vadd.f32 %v4727_v61, %v2904_v19 }
 0x37f   : > { %v3965_v39 = vpop.f32.mrf.mxu1 }
 0x380   : > { %3203 = vst.msk [vmem:[%s4739_s28 + $0x6c] sm:$0xf] %vm3175_vm13, %v3620_v14  ;;  %v3618_v10 = vpack.c.bf16 %v3040_v32, %v3040_v32  ;;  %v3045_v38 = vmax.f32 %v3013_v34, 0.0  ;;  %v3011_v37 = vadd.f32 %v3683_v12, %v2905_v36  ;;  %v2916_v1 = vadd.f32 %v3965_v39, %v4727_v61 }
 0x381   : > { %v2907_v41 = vpop.f32.mrf.mxu1 }
 0x382   : > { %3201 = vst.msk [vmem:[%s4739_s28 + $0x64] sm:$0xf] %vm3175_vm13, %v3618_v10  ;;  %v3623_v45 = vpack.c.bf16 %v3045_v38, %v3045_v38  ;;  %v3043_v56 = vmax.f32 %v3011_v37, 0.0  ;;  %v3014_v58 = vadd.f32 %v3688_v55, %v2916_v1  ;;  %v2908_v46 = vadd.f32 %v4727_v61, %v2907_v41 }
 0x384   : > { %3206 = vst.msk [vmem:[%s4739_s28 + $0x78] sm:$0xf] %vm3175_vm13, %v3623_v45  ;;  %v3621_v17 = vpack.c.bf16 %v3043_v56, %v3043_v56  ;;  %v3046_v20 = vmax.f32 %v3014_v58, 0.0  ;;  %v3012_v48 = vadd.f32 %v3684_v63, %v2908_v46 }
 0x386   : > { %3204 = vst.msk [vmem:[%s4739_s28 + $0x70] sm:$0xf] %vm3175_vm13, %v3621_v17  ;;  %v3624_v26 = vpack.c.bf16 %v3046_v20, %v3046_v20  ;;  %v3044_v31 = vmax.f32 %v3012_v48, 0.0 }
 0x388   : > { %3207 = vst.msk [vmem:[%s4739_s28 + $0x7c] sm:$0xf] %vm3175_vm13, %v3624_v26  ;;  %v3622_v42 = vpack.c.bf16 %v3044_v31, %v3044_v31 }
 0x38a   : > { %3205 = vst.msk [vmem:[%s4739_s28 + $0x74] sm:$0xf] %vm3175_vm13, %v3622_v42 }
 0x38b PF: > { %s19_s11 = sadd.s32 1, %s4093_s11   ;;  %s4869_s30 = smov %s4089_s10 }
 0x38c   : > { %p16_p5 = scmp.ge.s32.totalorder %s19_s11, 4   ;;  %s4870_s10 = smov %s4872_s12 }
 0x38e   :  { %18 = sbr.rel (!%p16_p5) target bundleno = 2 (0x2), region = 96 }

</bundles_post_ra>
